<compile_context>
chip_gen: v7x
topology: tpu7x:2x2x1
jax: 0.10.0
libtpu: 0.0.40
codegen_flags: <defaults>
</compile_context>

<pallas_src>
import jax
import jax.numpy as jnp
from jax.experimental import pallas as pl
from jax.experimental.pallas import tpu as pltpu

TB = 128  # batch tile (sublane-aligned); one grid step processes TB samples


def _qvalue_kernel(xa_ref, w1_ref, pk_ref, out_ref):
    # xa_ref : (TB, 8)    lanes 0..6 = state, lane 7 = action
    # w1_ref : (256, 256) fc1.weight^T, resident across all batch blocks
    # pk_ref : (16, 256)  rows 0..7  = combined fc_s/fc_a weight (input layer, K=8)
    #                     row  8     = [bs | ba]
    #                     row  9     = b1
    #                     row 10     = fc2.weight row
    #                     row 11[0]  = fc2.bias
    # out_ref: (TB, 1)
    xa = xa_ref[...]
    w_in = pk_ref[0:8, :]                                       # (8, 256)

    # Input layer (K=8): VPU broadcast-MAC, pairwise tree (depth 3, not 8-deep).
    p = [xa[:, i:i + 1] * w_in[i:i + 1, :] for i in range(8)]   # 8 x (TB, 256)
    acc = ((p[0] + p[1]) + (p[2] + p[3])) + ((p[4] + p[5]) + (p[6] + p[7]))
    cat = jnp.maximum(acc + pk_ref[8:9, :], 0.0)                # (TB, 256) == [h1 | h2]

    # fc1: single fused 256-wide contraction on the MXU.
    h = jnp.maximum(
        jnp.dot(cat, w1_ref[...], preferred_element_type=jnp.float32)
        + pk_ref[9:10, :],
        0.0)                                                    # (TB, 256)

    # fc2 (N=1): elementwise mul + cross-lane reduce (XLU), no padded matmul.
    q = jnp.sum(h * pk_ref[10:11, :], axis=-1, keepdims=True) + pk_ref[11:12, 0:1]
    out_ref[...] = q                                            # (TB, 1)


def pack_params(p):
    """One-time packing of PyTorch-layout params into kernel-friendly arrays."""
    f32 = jnp.float32
    pk = jnp.zeros((16, 256), f32)
    pk = pk.at[:7, :128].set(jnp.asarray(p["ws"], f32).T)       # fc_s.weight^T  (7,128)
    pk = pk.at[7, 128:].set(jnp.asarray(p["wa"], f32)[:, 0])    # fc_a.weight    (128,)
    pk = pk.at[8, :128].set(jnp.asarray(p["bs"], f32))
    pk = pk.at[8, 128:].set(jnp.asarray(p["ba"], f32))
    pk = pk.at[9, :].set(jnp.asarray(p["b1"], f32))
    pk = pk.at[10, :].set(jnp.asarray(p["w2"], f32)[0, :])
    pk = pk.at[11, 0].set(jnp.asarray(p["b2"], f32)[0])
    return {"w1t": jnp.asarray(p["w1"], f32).T, "pk": pk}       # w1t: (256,256)


@jax.jit
def qvalue_forward_batch(x, a, packed):
    """Batched (vmap-equivalent) forward. x: (B,7), a: (B,1) -> q: (B,1)."""
    B = x.shape[0]
    xa = jnp.concatenate(
        [x.astype(jnp.float32), a.astype(jnp.float32)], axis=-1)        # (B, 8)
    B_pad = -(-B // TB) * TB
    if B_pad != B:
        xa = jnp.pad(xa, ((0, B_pad - B), (0, 0)))

    out = pl.pallas_call(
        _qvalue_kernel,
        out_shape=jax.ShapeDtypeStruct((B_pad, 1), jnp.float32),
        grid=(B_pad // TB,),
        in_specs=[
            pl.BlockSpec((TB, 8), lambda i: (i, 0)),        # activations: tiled over batch
            pl.BlockSpec((256, 256), lambda i: (0, 0)),     # fc1 weight: resident
            pl.BlockSpec((16, 256), lambda i: (0, 0)),      # packed small params: resident
        ],
        out_specs=pl.BlockSpec((TB, 1), lambda i: (i, 0)),
        compiler_params=pltpu.CompilerParams(
            dimension_semantics=("parallel",)),             # batch axis -> megacore on v7x
    )(xa, packed["w1t"], packed["pk"])
    return out[:B]


def qvalue_forward(x, a, packed):
    """Single-sample forward matching the PyTorch module: x (7,), a (1,) -> (1,)."""
    return qvalue_forward_batch(x[None, :], a[None, :], packed)[0]


def init_params(key):
    """Deterministic PyTorch-style (uniform +-1/sqrt(fan_in)) initialization."""
    ks = jax.random.split(key, 8)

    def lin(kw, kb, fan_in, fan_out):
        bound = 1.0 / jnp.sqrt(jnp.float32(fan_in))
        w = jax.random.uniform(kw, (fan_out, fan_in), jnp.float32, -bound, bound)
        b = jax.random.uniform(kb, (fan_out,), jnp.float32, -bound, bound)
        return w, b

    ws, bs = lin(ks[0], ks[1], 7, 128)     # fc_s
    wa, ba = lin(ks[2], ks[3], 1, 128)     # fc_a
    w1, b1 = lin(ks[4], ks[5], 256, 256)   # fc1
    w2, b2 = lin(ks[6], ks[7], 256, 1)     # fc2
    return dict(ws=ws, bs=bs, wa=wa, ba=ba, w1=w1, b1=b1, w2=w2, b2=b2)


def reference_forward(x, a, p):
    h1 = jnp.maximum(x @ p["ws"].T + p["bs"], 0.0)
    h2 = jnp.maximum(a @ p["wa"].T + p["ba"], 0.0)
    cat = jnp.concatenate([h1, h2], axis=0)
    q = jnp.maximum(cat @ p["w1"].T + p["b1"], 0.0)
    return q @ p["w2"].T + p["b2"]


if __name__ == "__main__":
    key = jax.random.PRNGKey(0)
    kp, kx, ka, kxb, kab = jax.random.split(key, 5)

    params = init_params(kp)
    packed = pack_params(params)   # one-time packing; NOT redone per forward call

    # 1) Single sample, exactly the PyTorch module's (unbatched) forward.
    x = jax.random.normal(kx, (7,), jnp.float32)
    a = jax.random.normal(ka, (1,), jnp.float32)
    q = jax.block_until_ready(qvalue_forward(x, a, packed))
    q_ref = reference_forward(x, a, params)
    assert q.shape == (1,)
    assert jnp.allclose(q, q_ref, atol=1e-4, rtol=1e-4), (q, q_ref)

    # 2) Small batch (vmap of the module), exercises the batch grid, padding and
    #    resident-weight reuse across grid steps.
    B = 200
    xb = jax.random.normal(kxb, (B, 7), jnp.float32)
    ab = jax.random.normal(kab, (B, 1), jnp.float32)
    qb = jax.block_until_ready(qvalue_forward_batch(xb, ab, packed))
    qb_ref = jax.vmap(lambda xi, ai: reference_forward(xi, ai, params))(xb, ab)
    assert qb.shape == (B, 1)
    assert jnp.allclose(qb, qb_ref, atol=1e-4, rtol=1e-4)

    print("KERNEL_OK")
</pallas_src>

<mosaic_0001>
module attributes {stable_mosaic.version = 11 : i64} {
  func.func @_qvalue_kernel(%arg0: i32, %arg1: memref<128x8xf32, #tpu.memory_space<vmem>>, %arg2: memref<256x256xf32, #tpu.memory_space<vmem>>, %arg3: memref<16x256xf32, #tpu.memory_space<vmem>>, %arg4: memref<128x1xf32, #tpu.memory_space<vmem>>) attributes {dimension_semantics = [#tpu.dimension_semantics<parallel>], iteration_bounds = array<i64: 1>, scalar_prefetch = 0 : i64, scratch_operands = 0 : i64, tpu.core_type = #tpu.core_type<tc>, window_params = [{transform_indices = @transform_0, window_bounds = array<i64: 128, 8>}, {pipeline_mode = #tpu.pipeline_mode<synchronous>, transform_indices = @transform_1, window_bounds = array<i64: 256, 256>}, {pipeline_mode = #tpu.pipeline_mode<synchronous>, transform_indices = @transform_2, window_bounds = array<i64: 16, 256>}, {transform_indices = @transform_3, window_bounds = array<i64: 128, 1>}]} {
    %c0 = arith.constant 0 : index
    %c0_0 = arith.constant 0 : index
    %0 = vector.load %arg1[%c0, %c0_0] : memref<128x8xf32, #tpu.memory_space<vmem>>, vector<128x8xf32>
    %c0_1 = arith.constant 0 : index
    %c0_2 = arith.constant 0 : index
    %1 = vector.load %arg3[%c0_1, %c0_2] : memref<16x256xf32, #tpu.memory_space<vmem>>, vector<8x256xf32>
    %2 = vector.extract_strided_slice %0 {offsets = [0, 0], sizes = [128, 1], strides = [1, 1]} : vector<128x8xf32> to vector<128x1xf32>
    %3 = vector.extract_strided_slice %1 {offsets = [0, 0], sizes = [1, 256], strides = [1, 1]} : vector<8x256xf32> to vector<1x256xf32>
    %4 = vector.broadcast %2 : vector<128x1xf32> to vector<128x256xf32>
    %5 = vector.broadcast %3 : vector<1x256xf32> to vector<128x256xf32>
    %6 = arith.mulf %4, %5 : vector<128x256xf32>
    %7 = vector.extract_strided_slice %0 {offsets = [0, 1], sizes = [128, 1], strides = [1, 1]} : vector<128x8xf32> to vector<128x1xf32>
    %8 = vector.extract_strided_slice %1 {offsets = [1, 0], sizes = [1, 256], strides = [1, 1]} : vector<8x256xf32> to vector<1x256xf32>
    %9 = vector.broadcast %7 : vector<128x1xf32> to vector<128x256xf32>
    %10 = vector.broadcast %8 : vector<1x256xf32> to vector<128x256xf32>
    %11 = arith.mulf %9, %10 : vector<128x256xf32>
    %12 = vector.extract_strided_slice %0 {offsets = [0, 2], sizes = [128, 1], strides = [1, 1]} : vector<128x8xf32> to vector<128x1xf32>
    %13 = vector.extract_strided_slice %1 {offsets = [2, 0], sizes = [1, 256], strides = [1, 1]} : vector<8x256xf32> to vector<1x256xf32>
    %14 = vector.broadcast %12 : vector<128x1xf32> to vector<128x256xf32>
    %15 = vector.broadcast %13 : vector<1x256xf32> to vector<128x256xf32>
    %16 = arith.mulf %14, %15 : vector<128x256xf32>
    %17 = vector.extract_strided_slice %0 {offsets = [0, 3], sizes = [128, 1], strides = [1, 1]} : vector<128x8xf32> to vector<128x1xf32>
    %18 = vector.extract_strided_slice %1 {offsets = [3, 0], sizes = [1, 256], strides = [1, 1]} : vector<8x256xf32> to vector<1x256xf32>
    %19 = vector.broadcast %17 : vector<128x1xf32> to vector<128x256xf32>
    %20 = vector.broadcast %18 : vector<1x256xf32> to vector<128x256xf32>
    %21 = arith.mulf %19, %20 : vector<128x256xf32>
    %22 = vector.extract_strided_slice %0 {offsets = [0, 4], sizes = [128, 1], strides = [1, 1]} : vector<128x8xf32> to vector<128x1xf32>
    %23 = vector.extract_strided_slice %1 {offsets = [4, 0], sizes = [1, 256], strides = [1, 1]} : vector<8x256xf32> to vector<1x256xf32>
    %24 = vector.broadcast %22 : vector<128x1xf32> to vector<128x256xf32>
    %25 = vector.broadcast %23 : vector<1x256xf32> to vector<128x256xf32>
    %26 = arith.mulf %24, %25 : vector<128x256xf32>
    %27 = vector.extract_strided_slice %0 {offsets = [0, 5], sizes = [128, 1], strides = [1, 1]} : vector<128x8xf32> to vector<128x1xf32>
    %28 = vector.extract_strided_slice %1 {offsets = [5, 0], sizes = [1, 256], strides = [1, 1]} : vector<8x256xf32> to vector<1x256xf32>
    %29 = vector.broadcast %27 : vector<128x1xf32> to vector<128x256xf32>
    %30 = vector.broadcast %28 : vector<1x256xf32> to vector<128x256xf32>
    %31 = arith.mulf %29, %30 : vector<128x256xf32>
    %32 = vector.extract_strided_slice %0 {offsets = [0, 6], sizes = [128, 1], strides = [1, 1]} : vector<128x8xf32> to vector<128x1xf32>
    %33 = vector.extract_strided_slice %1 {offsets = [6, 0], sizes = [1, 256], strides = [1, 1]} : vector<8x256xf32> to vector<1x256xf32>
    %34 = vector.broadcast %32 : vector<128x1xf32> to vector<128x256xf32>
    %35 = vector.broadcast %33 : vector<1x256xf32> to vector<128x256xf32>
    %36 = arith.mulf %34, %35 : vector<128x256xf32>
    %37 = vector.extract_strided_slice %0 {offsets = [0, 7], sizes = [128, 1], strides = [1, 1]} : vector<128x8xf32> to vector<128x1xf32>
    %38 = vector.extract_strided_slice %1 {offsets = [7, 0], sizes = [1, 256], strides = [1, 1]} : vector<8x256xf32> to vector<1x256xf32>
    %39 = vector.broadcast %37 : vector<128x1xf32> to vector<128x256xf32>
    %40 = vector.broadcast %38 : vector<1x256xf32> to vector<128x256xf32>
    %41 = arith.mulf %39, %40 : vector<128x256xf32>
    %42 = arith.addf %6, %11 : vector<128x256xf32>
    %43 = arith.addf %16, %21 : vector<128x256xf32>
    %44 = arith.addf %42, %43 : vector<128x256xf32>
    %45 = arith.addf %26, %31 : vector<128x256xf32>
    %46 = arith.addf %36, %41 : vector<128x256xf32>
    %47 = arith.addf %45, %46 : vector<128x256xf32>
    %48 = arith.addf %44, %47 : vector<128x256xf32>
    %c8 = arith.constant 8 : index
    %c0_3 = arith.constant 0 : index
    %49 = vector.load %arg3[%c8, %c0_3] : memref<16x256xf32, #tpu.memory_space<vmem>>, vector<1x256xf32>
    %50 = vector.broadcast %49 : vector<1x256xf32> to vector<128x256xf32>
    %51 = arith.addf %48, %50 : vector<128x256xf32>
    %cst = arith.constant 0.000000e+00 : f32
    %52 = vector.broadcast %cst : f32 to vector<128x256xf32>
    %53 = arith.maximumf %51, %52 : vector<128x256xf32>
    %c0_4 = arith.constant 0 : index
    %c0_5 = arith.constant 0 : index
    %54 = vector.load %arg2[%c0_4, %c0_5] : memref<256x256xf32, #tpu.memory_space<vmem>>, vector<256x256xf32>
    %cst_6 = arith.constant dense<0.000000e+00> : vector<128x256xf32>
    %55 = tpu.matmul %53, %54, %cst_6 {dimension_numbers = #tpu.dot_dimension_numbers<[1], [0], [0], [1], [0, 0, 1, 1], [], []>} : vector<128x256xf32>, vector<256x256xf32>, vector<128x256xf32> -> vector<128x256xf32>
    %c9 = arith.constant 9 : index
    %c0_7 = arith.constant 0 : index
    %56 = vector.load %arg3[%c9, %c0_7] : memref<16x256xf32, #tpu.memory_space<vmem>>, vector<1x256xf32>
    %57 = vector.broadcast %56 : vector<1x256xf32> to vector<128x256xf32>
    %58 = arith.addf %55, %57 : vector<128x256xf32>
    %cst_8 = arith.constant 0.000000e+00 : f32
    %59 = vector.broadcast %cst_8 : f32 to vector<128x256xf32>
    %60 = arith.maximumf %58, %59 : vector<128x256xf32>
    %c10 = arith.constant 10 : index
    %c0_9 = arith.constant 0 : index
    %61 = vector.load %arg3[%c10, %c0_9] : memref<16x256xf32, #tpu.memory_space<vmem>>, vector<1x256xf32>
    %62 = vector.broadcast %61 : vector<1x256xf32> to vector<128x256xf32>
    %63 = arith.mulf %60, %62 : vector<128x256xf32>
    %cst_10 = arith.constant dense<0.000000e+00> : vector<128xf32>
    %64 = vector.multi_reduction <add>, %63, %cst_10 [1] : vector<128x256xf32> to vector<128xf32>
    %65 = vector.shape_cast %64 : vector<128xf32> to vector<128x1xf32>
    %c11 = arith.constant 11 : index
    %c0_11 = arith.constant 0 : index
    %66 = vector.load %arg3[%c11, %c0_11] : memref<16x256xf32, #tpu.memory_space<vmem>>, vector<1x1xf32>
    %67 = vector.broadcast %66 : vector<1x1xf32> to vector<128x1xf32>
    %68 = arith.addf %65, %67 : vector<128x1xf32>
    %c0_12 = arith.constant 0 : index
    %c0_13 = arith.constant 0 : index
    %69 = vector.load %arg4[%c0_12, %c0_13] : memref<128x1xf32, #tpu.memory_space<vmem>>, vector<128x1xf32>
    tpu.vector_store %arg4[%c0_12, %c0_13], %68 {strides = array<i32>} : memref<128x1xf32, #tpu.memory_space<vmem>>, vector<128x1xf32>,
    return
  }
  func.func @transform_0(%arg0: i32) -> (i32, i32) {
    %c0_i32 = arith.constant 0 : i32
    %c0_i32_0 = arith.constant 0 : i32
    return %arg0, %c0_i32 : i32, i32
  }
  func.func @transform_1(%arg0: i32) -> (i32, i32) {
    %c0_i32 = arith.constant 0 : i32
    %c0_i32_0 = arith.constant 0 : i32
    %c0_i32_1 = arith.constant 0 : i32
    return %c0_i32, %c0_i32_0 : i32, i32
  }
  func.func @transform_2(%arg0: i32) -> (i32, i32) {
    %c0_i32 = arith.constant 0 : i32
    %c0_i32_0 = arith.constant 0 : i32
    %c0_i32_1 = arith.constant 0 : i32
    return %c0_i32, %c0_i32_0 : i32, i32
  }
  func.func @transform_3(%arg0: i32) -> (i32, i32) {
    %c0_i32 = arith.constant 0 : i32
    %c0_i32_0 = arith.constant 0 : i32
    return %arg0, %c0_i32 : i32, i32
  }
}

</mosaic_0001>

<bundles_post_ra>
// kernel: qvalue_forward_batch.1
= control target key start
LH: loop header
LB: loop body
LE: loop exit
PB: predicated region body
PF: predicated region fallthrough
CT: control target
= control target key end

     0   :  { %8 = vsyncpa [#allocation3], 0  ;;  %s1793_s12 = smov [#allocation2]   ;;  %s3046_s0 = inlined_call_operand.vmem [shape: f32[128,8], index: 0, kind: input, shape index: {}]   ;;  %s3047_s1 = inlined_call_operand.hbm [shape: f32[256,256], index: 1, kind: input, shape index: {}]   ;;  %s3048_s2 = inlined_call_operand.vmem [shape: f32[16,256], index: 2, kind: input, shape index: {}]   ;;  %s3049_s3 = inlined_call_operand.vmem [shape: f32[128,1], index: 3, kind: output, shape index: {}]  }
   0x1   :  { %s16_s13 = sshll.u32 %s1793_s12, 4  ;;  %s1769_s16 = scalar_lea.hbm %s3047_s1, 8192  ;;  %s17_s13 = int_to_ptr.vmem [resolvable:$true] %s16_s13 }
   0x2   :  { %p1770_p0 = scmp.ne.s32.totalorder %s3047_s1, %s1769_s16  ;;  %p1773_p1 = scmp.lt.u32.totalorder %s1769_s16, %s3047_s1 }
   0x4   :  { %p1775_p2 = pnand %p1773_p1, %p1770_p0 }
   0x6   :  { %1778 = shalt.err (!%p1775_p2)
}
   0x7   :  { %s1779_s21 = scalar_lea.vmem %s17_s13, 8192  ;;  %p1784_p4 = scmp.lt.s32.totalorder %s17_s13, %s17_s13 }
   0x8   :  { %p1780_p3 = scmp.ne.s32.totalorder %s17_s13, %s1779_s21  ;;  %p1785_p5 = scmp.lt.s32.totalorder %s1779_s21, %s1779_s21 }
   0xa   :  { %p1786_p6 = por %p1785_p5, %p1784_p4 }
   0xc   :  { %p1787_p7 = pnand %p1786_p6, %p1780_p3 }
   0xe   :  { %1790 = shalt.err (!%p1787_p7)
}
   0xf   :  { %s1794_s22 = smov 256   ;;  %s1795_s23 = smov 16  }
  0x10   :  { %22 = dma.hbm_to_vmem [thread:$0]  %s3047_s1, 8192, %s17_s13, [#allocation3], %s1794_s22, %s1794_s22, %s1795_s23  }
  0x11   :  { %1791 = dma.done.wait [#allocation3], 8192  }
  0x12   :  { %1792 = vsyncadd [#allocation3], 4294959104  ;;  %v1796_v0 = vmov 0   ;;  %v1839_v1 = vld [vmem:[%s3046_s0 + $0x10] sm:$0xff]  ;;  %v1844_v2 = vld [vmem:[%s3046_s0] sm:$0xff]  ;;  %v1797_v17 = vmov 1  }
  0x13   :  { %1708 = vset.pattern.permute.xlu1 %v1796_v0  ;;  %1707 = vset.pattern.permute.xlu0 %v1796_v0  ;;  %v1851_v3 = vld [vmem:[%s3046_s0 + $0x18] sm:$0xff]  ;;  %v1856_v4 = vld [vmem:[%s3046_s0 + $0x8] sm:$0xff]  ;;  %v1868_v6 = vld [vmem:[%s3046_s0 + $0x20] sm:$0xff]  ;;  %v3056_v18 = vmov 2   ;;  %v3054_v19 = vmov 7   ;;  %v3060_v20 = vmov 3  }
  0x14   :  { %58 = vperm.xlu1 %1708, %v1839_v1   ;;  %48 = vperm.xlu0 %1707, %v1844_v2   ;;  %v1863_v5 = vld [vmem:[%s3046_s0 + $0x28] sm:$0xff]  ;;  %v1875_v7 = vld [vmem:[%s3046_s0 + $0x38] sm:$0xff]  ;;  %v1880_v8 = vld [vmem:[%s3046_s0 + $0x30] sm:$0xff]  ;;  %v3058_v33 = vmov 4   ;;  %v3052_v48 = vmov 5   ;;  %v3050_v53 = vmov 6  }
  0x15   :  { %v1887_v9 = vld [vmem:[%s3046_s0 + $0x48] sm:$0xff]  ;;  %v1892_v10 = vld [vmem:[%s3046_s0 + $0x40] sm:$0xff]  ;;  %v1899_v11 = vld [vmem:[%s3046_s0 + $0x58] sm:$0xff]  ;;  %vm1575_vm0 = vcmask 7168  }
  0x16   :  { %v1904_v12 = vld [vmem:[%s3046_s0 + $0x50] sm:$0xff]  ;;  %v1911_v13 = vld [vmem:[%s3046_s0 + $0x68] sm:$0xff]  ;;  %v1916_v14 = vld [vmem:[%s3046_s0 + $0x60] sm:$0xff] }
  0x17   :  { %v1923_v15 = vld [vmem:[%s3046_s0 + $0x78] sm:$0xff]  ;;  %v1928_v16 = vld [vmem:[%s3046_s0 + $0x70] sm:$0xff]  ;;  %v1196_v21 = vld [vmem:[#allocation2 + $0x8] sm:$0xff] }
  0x18   :  { %63 = vperm.xlu1 %1708, %v1851_v3   ;;  %53 = vperm.xlu0 %1707, %v1856_v4   ;;  %v1198_v22 = vld [vmem:[#allocation2 + $0x18] sm:$0xff]  ;;  %v1195_v24 = vld [vmem:[#allocation2] sm:$0xff]  ;;  %v1197_v25 = vld [vmem:[#allocation2 + $0x10] sm:$0xff] }
  0x19   :  { %v1600_v23 = vpack.c.bf16 %v1198_v22, %v1196_v21  ;;  %v1602_v26 = vpack.c.bf16 %v1197_v25, %v1195_v24  ;;  %v1200_v27 = vld [vmem:[#allocation2 + $0x28] sm:$0xff]  ;;  %v1202_v28 = vld [vmem:[#allocation2 + $0x38] sm:$0xff]  ;;  %v1199_v30 = vld [vmem:[#allocation2 + $0x20] sm:$0xff] }
  0x1a   :  { %v1604_v29 = vpack.c.bf16 %v1202_v28, %v1200_v27  ;;  %v1201_v31 = vld [vmem:[#allocation2 + $0x30] sm:$0xff]  ;;  %v1204_v34 = vld [vmem:[#allocation2 + $0x48] sm:$0xff]  ;;  %v1206_v35 = vld [vmem:[#allocation2 + $0x58] sm:$0xff] }
  0x1b   :  { %1664 = vmatprep.subr.bf16.mxu1 %v1600_v23  ;;  %1601 = vmatprep.subr.bf16.mxu0 %v1600_v23  ;;  %v1606_v32 = vpack.c.bf16 %v1201_v31, %v1199_v30  ;;  %v1608_v36 = vpack.c.bf16 %v1206_v35, %v1204_v34  ;;  %v1203_v37 = vld [vmem:[#allocation2 + $0x40] sm:$0xff]  ;;  %v1205_v38 = vld [vmem:[#allocation2 + $0x50] sm:$0xff]  ;;  %v1208_v40 = vld [vmem:[#allocation2 + $0x68] sm:$0xff] }
  0x1c   :  { %73 = vperm.xlu1 %1708, %v1863_v5   ;;  %68 = vperm.xlu0 %1707, %v1868_v6   ;;  %v1610_v39 = vpack.c.bf16 %v1205_v38, %v1203_v37  ;;  %v1210_v41 = vld [vmem:[#allocation2 + $0x78] sm:$0xff]  ;;  %v1207_v43 = vld [vmem:[#allocation2 + $0x60] sm:$0xff]  ;;  %v1209_v44 = vld [vmem:[#allocation2 + $0x70] sm:$0xff] }
  0x1d   :  { %1680 = vmatpush1.bf16.msra.mxu1 %v1602_v26  ;;  %1603 = vmatpush1.bf16.msra.mxu0 %v1602_v26  ;;  %v1612_v42 = vpack.c.bf16 %v1210_v41, %v1208_v40  ;;  %v1614_v45 = vpack.c.bf16 %v1209_v44, %v1207_v43  ;;  %v1212_v46 = vld [vmem:[#allocation2 + $0x88] sm:$0xff]  ;;  %v1214_v47 = vld [vmem:[#allocation2 + $0x98] sm:$0xff]  ;;  %v1211_v50 = vld [vmem:[#allocation2 + $0x80] sm:$0xff] }
  0x1e   :  { %1665 = vmatprep.subr.bf16.mxu1 %v1604_v29  ;;  %1605 = vmatprep.subr.bf16.mxu0 %v1604_v29  ;;  %v1616_v49 = vpack.c.bf16 %v1214_v47, %v1212_v46  ;;  %v1213_v51 = vld [vmem:[#allocation2 + $0x90] sm:$0xff]  ;;  %v1216_v54 = vld [vmem:[#allocation2 + $0xa8] sm:$0xff]  ;;  %v1218_v55 = vld [vmem:[#allocation2 + $0xb8] sm:$0xff] }
  0x1f   :  { %v1618_v52 = vpack.c.bf16 %v1213_v51, %v1211_v50  ;;  %v1620_v56 = vpack.c.bf16 %v1218_v55, %v1216_v54  ;;  %v1215_v57 = vld [vmem:[#allocation2 + $0xa0] sm:$0xff]  ;;  %v1217_v58 = vld [vmem:[#allocation2 + $0xb0] sm:$0xff]  ;;  %v1220_v60 = vld [vmem:[#allocation2 + $0xc8] sm:$0xff] }
  0x20   :  { %83 = vperm.xlu1 %1708, %v1875_v7   ;;  %78 = vperm.xlu0 %1707, %v1880_v8   ;;  %v1622_v59 = vpack.c.bf16 %v1217_v58, %v1215_v57  ;;  %v1222_v61 = vld [vmem:[#allocation2 + $0xd8] sm:$0xff]  ;;  %v1219_v63 = vld [vmem:[#allocation2 + $0xc0] sm:$0xff]  ;;  %v1221_v0 = vld [vmem:[#allocation2 + $0xd0] sm:$0xff] }
  0x21   :  { %1681 = vmatpush1.bf16.msra.mxu1 %v1606_v32  ;;  %1607 = vmatpush1.bf16.msra.mxu0 %v1606_v32  ;;  %v1624_v62 = vpack.c.bf16 %v1222_v61, %v1220_v60  ;;  %v1224_v21 = vld [vmem:[#allocation2 + $0xe8] sm:$0xff]  ;;  %v1226_v22 = vld [vmem:[#allocation2 + $0xf8] sm:$0xff]  ;;  %v1223_v24 = vld [vmem:[#allocation2 + $0xe0] sm:$0xff] }
  0x22   :  { %1666 = vmatprep.subr.bf16.mxu1 %v1608_v36  ;;  %1609 = vmatprep.subr.bf16.mxu0 %v1608_v36  ;;  %v1628_v23 = vpack.c.bf16 %v1226_v22, %v1224_v21  ;;  %v1225_v25 = vld [vmem:[#allocation2 + $0xf0] sm:$0xff]  ;;  %v1228_v27 = vld [vmem:[#allocation2 + $0x108] sm:$0xff]  ;;  %v1230_v28 = vld [vmem:[#allocation2 + $0x118] sm:$0xff] }
  0x23   :  { %v1630_v26 = vpack.c.bf16 %v1225_v25, %v1223_v24  ;;  %v1632_v29 = vpack.c.bf16 %v1230_v28, %v1228_v27  ;;  %v1227_v30 = vld [vmem:[#allocation2 + $0x100] sm:$0xff]  ;;  %v1229_v31 = vld [vmem:[#allocation2 + $0x110] sm:$0xff]  ;;  %v1232_v34 = vld [vmem:[#allocation2 + $0x128] sm:$0xff] }
  0x24   :  { %93 = vperm.xlu1 %1708, %v1887_v9   ;;  %88 = vperm.xlu0 %1707, %v1892_v10   ;;  %v1634_v32 = vpack.c.bf16 %v1229_v31, %v1227_v30  ;;  %v1234_v35 = vld [vmem:[#allocation2 + $0x138] sm:$0xff]  ;;  %v1231_v37 = vld [vmem:[#allocation2 + $0x120] sm:$0xff]  ;;  %v1233_v38 = vld [vmem:[#allocation2 + $0x130] sm:$0xff] }
  0x25   :  { %1682 = vmatpush1.bf16.msra.mxu1 %v1610_v39  ;;  %1611 = vmatpush1.bf16.msra.mxu0 %v1610_v39  ;;  %v1636_v36 = vpack.c.bf16 %v1234_v35, %v1232_v34  ;;  %v1638_v39 = vpack.c.bf16 %v1233_v38, %v1231_v37  ;;  %v1236_v40 = vld [vmem:[#allocation2 + $0x148] sm:$0xff]  ;;  %v1238_v41 = vld [vmem:[#allocation2 + $0x158] sm:$0xff]  ;;  %v1235_v43 = vld [vmem:[#allocation2 + $0x140] sm:$0xff] }
  0x26   :  { %1667 = vmatprep.subr.bf16.mxu1 %v1612_v42  ;;  %1613 = vmatprep.subr.bf16.mxu0 %v1612_v42  ;;  %v1640_v42 = vpack.c.bf16 %v1238_v41, %v1236_v40  ;;  %v1237_v44 = vld [vmem:[#allocation2 + $0x150] sm:$0xff]  ;;  %v1240_v47 = vld [vmem:[#allocation2 + $0x168] sm:$0xff]  ;;  %v1239_v50 = vld [vmem:[#allocation2 + $0x160] sm:$0xff] }
  0x27   :  { %v1241_v51 = vld [vmem:[#allocation2 + $0x170] sm:$0xff]  ;;  %v1244_v57 = vld [vmem:[#allocation2 + $0x188] sm:$0xff]  ;;  %v1246_v58 = vld [vmem:[#allocation2 + $0x198] sm:$0xff] }
  0x28   :  { %103 = vperm.xlu1 %1708, %v1899_v11   ;;  %98 = vperm.xlu0 %1707, %v1904_v12   ;;  %v1646_v54 = vpack.c.bf16 %v1241_v51, %v1239_v50  ;;  %v1245_v60 = vld [vmem:[#allocation2 + $0x190] sm:$0xff]  ;;  %v1648_v61 = vpack.c.bf16 %v1246_v58, %v1244_v57  ;;  %v1250_v21 = vld [vmem:[#allocation2 + $0x1b8] sm:$0xff]  ;;  %v1247_v22 = vld [vmem:[#allocation2 + $0x1a0] sm:$0xff] }
  0x29   :  { %1683 = vmatpush1.bf16.msra.mxu1 %v1614_v45  ;;  %1615 = vmatpush1.bf16.msra.mxu0 %v1614_v45  ;;  %v1252_v28 = vld [vmem:[#allocation2 + $0x1c8] sm:$0xff]  ;;  %v1251_v31 = vld [vmem:[#allocation2 + $0x1c0] sm:$0xff]  ;;  %v1258_v37 = vld [vmem:[#allocation2 + $0x1f8] sm:$0xff] }
  0x2a   :  { %1668 = vmatprep.subr.bf16.mxu1 %v1616_v49  ;;  %1617 = vmatprep.subr.bf16.mxu0 %v1616_v49  ;;  %v1242_v49 = vld [vmem:[#allocation2 + $0x178] sm:$0xff]  ;;  %v1257_v40 = vld [vmem:[#allocation2 + $0x1f0] sm:$0xff]  ;;  %v2058_v57 = vld [vmem:[%s3048_s2 + $0x8] sm:$0xff] }
  0x2c   :  { %113 = vperm.xlu1 %1708, %v1911_v13   ;;  %108 = vperm.xlu0 %1707, %v1916_v14  }
  0x2d   :  { %1684 = vmatpush1.bf16.msra.mxu1 %v1618_v52  ;;  %1619 = vmatpush1.bf16.msra.mxu0 %v1618_v52  ;;  %v1644_v52 = vpack.c.bf16 %v1242_v49, %v1240_v47 }
  0x2e   :  { %1669 = vmatprep.subr.bf16.mxu1 %v1620_v56  ;;  %1621 = vmatprep.subr.bf16.mxu0 %v1620_v56 }
  0x30   :  { %123 = vperm.xlu1 %1708, %v1923_v15   ;;  %118 = vperm.xlu0 %1707, %v1928_v16  }
  0x31   :  { %1685 = vmatpush1.bf16.msra.mxu1 %v1622_v59  ;;  %1623 = vmatpush1.bf16.msra.mxu0 %v1622_v59  ;;  %v1243_v59 = vld [vmem:[#allocation2 + $0x180] sm:$0xff] }
  0x32   :  { %1670 = vmatprep.subr.bf16.mxu1 %v1624_v62  ;;  %1625 = vmatprep.subr.bf16.mxu0 %v1624_v62  ;;  %v1650_v62 = vpack.c.bf16 %v1245_v60, %v1243_v59 }
  0x34   :  { %1710 = vset.pattern.permute.xlu1 %v1797_v17  ;;  %1709 = vset.pattern.permute.xlu0 %v1797_v17  ;;  %v1626_v17 = vpack.c.bf16 %v1221_v0, %v1219_v63 }
  0x35   :  { %171 = vperm.xlu1 %1710, %v1856_v4   ;;  %167 = vperm.xlu0 %1709, %v1844_v2  }
  0x36   :  { %1686 = vmatpush1.bf16.msra.mxu1 %v1626_v17  ;;  %1627 = vmatpush1.bf16.msra.mxu0 %v1626_v17  ;;  %v1248_v17 = vld [vmem:[#allocation2 + $0x1a8] sm:$0xff] }
  0x37   :  { %1671 = vmatprep.subr.bf16.mxu1 %v1628_v23  ;;  %1629 = vmatprep.subr.bf16.mxu0 %v1628_v23  ;;  %v1249_v23 = vld [vmem:[#allocation2 + $0x1b0] sm:$0xff]  ;;  %v1652_v24 = vpack.c.bf16 %v1250_v21, %v1248_v17 }
  0x38   :  { %v1654_v25 = vpack.c.bf16 %v1249_v23, %v1247_v22 }
  0x39   :  { %175 = vperm.xlu1 %1710, %v1839_v1   ;;  %179 = vperm.xlu0 %1709, %v1851_v3  }
  0x3a   :  { %1687 = vmatpush1.bf16.msra.mxu1 %v1630_v26  ;;  %1631 = vmatpush1.bf16.msra.mxu0 %v1630_v26 }
  0x3b   :  { %1672 = vmatprep.subr.bf16.mxu1 %v1632_v29  ;;  %1633 = vmatprep.subr.bf16.mxu0 %v1632_v29  ;;  %v1254_v29 = vld [vmem:[#allocation2 + $0x1d8] sm:$0xff] }
  0x3c   :  { %v1656_v30 = vpack.c.bf16 %v1254_v29, %v1252_v28 }
  0x3d   :  { %183 = vperm.xlu1 %1710, %v1868_v6   ;;  %187 = vperm.xlu0 %1709, %v1863_v5  }
  0x3e   :  { %1688 = vmatpush1.bf16.msra.mxu1 %v1634_v32  ;;  %1635 = vmatpush1.bf16.msra.mxu0 %v1634_v32 }
  0x3f   :  { %1673 = vmatprep.subr.bf16.mxu1 %v1636_v36  ;;  %1637 = vmatprep.subr.bf16.mxu0 %v1636_v36  ;;  %v1256_v36 = vld [vmem:[#allocation2 + $0x1e8] sm:$0xff] }
  0x40   :  { %v1660_v38 = vpack.c.bf16 %v1258_v37, %v1256_v36 }
  0x41   :  { %191 = vperm.xlu1 %1710, %v1880_v8   ;;  %195 = vperm.xlu0 %1709, %v1875_v7  }
  0x42   :  { %1689 = vmatpush1.bf16.msra.mxu1 %v1638_v39  ;;  %1639 = vmatpush1.bf16.msra.mxu0 %v1638_v39  ;;  %v1255_v39 = vld [vmem:[#allocation2 + $0x1e0] sm:$0xff] }
  0x43   :  { %1674 = vmatprep.subr.bf16.mxu1 %v1640_v42  ;;  %1641 = vmatprep.subr.bf16.mxu0 %v1640_v42  ;;  %v1662_v41 = vpack.c.bf16 %v1257_v40, %v1255_v39 }
  0x45   :  { %199 = vperm.xlu1 %1710, %v1892_v10   ;;  %203 = vperm.xlu0 %1709, %v1887_v9  }
  0x49   :  { %207 = vperm.xlu1 %1710, %v1904_v12   ;;  %211 = vperm.xlu0 %1709, %v1899_v11  }
  0x4d   :  { %215 = vperm.xlu1 %1710, %v1916_v14   ;;  %219 = vperm.xlu0 %1709, %v1911_v13  }
  0x51   :  { %223 = vperm.xlu1 %1710, %v1928_v16   ;;  %227 = vperm.xlu0 %1709, %v1923_v15  }
  0x55   :  { %1711 = vset.pattern.permute.xlu1 %v3056_v18  ;;  %1721 = vset.pattern.permute.xlu0 %v3054_v19 }
  0x56   :  { %271 = vperm.xlu1 %1711, %v1844_v2   ;;  %795 = vperm.xlu0 %1721, %v1856_v4  }
  0x5a   :  { %279 = vperm.xlu1 %1711, %v1839_v1   ;;  %831 = vperm.xlu0 %1721, %v1904_v12  }
  0x5e   :  { %283 = vperm.xlu1 %1711, %v1851_v3   ;;  %807 = vperm.xlu0 %1721, %v1868_v6  }
  0x62   :  { %291 = vperm.xlu1 %1711, %v1863_v5   ;;  %843 = vperm.xlu0 %1721, %v1911_v13  }
  0x66   :  { %299 = vperm.xlu1 %1711, %v1875_v7   ;;  %1746 = vset.pattern.permute.xlu0 %v3060_v20 }
  0x67   :  { %407 = vperm.xlu0 %1746, %v1892_v10  }
  0x6a   :  { %1712 = vset.pattern.permute.xlu1 %v3060_v20 }
  0x6b   :  { %375 = vperm.xlu1 %1712, %v1844_v2   ;;  %383 = vperm.xlu0 %1746, %v1839_v1  }
  0x6f   :  { %1713 = vset.pattern.permute.xlu1 %v3058_v33  ;;  %419 = vperm.xlu0 %1746, %v1899_v11  }
  0x70   :  { %479 = vperm.xlu1 %1713, %v1844_v2  }
  0x73   :  { %395 = vperm.xlu0 %1746, %v1863_v5  }
  0x74   :  { %511 = vperm.xlu1 %1713, %v1892_v10  }
  0x77   :  { %431 = vperm.xlu0 %1746, %v1928_v16  }
  0x78   :  { %1714 = vset.pattern.permute.xlu1 %v3052_v48 }
  0x79   :  { %615 = vperm.xlu1 %1714, %v1892_v10  }
  0x7b   :  { %1749 = vset.pattern.permute.xlu0 %v3050_v53 }
  0x7c   :  { %719 = vperm.xlu0 %1749, %v1892_v10  }
  0x7d   :  { %1715 = vset.pattern.permute.xlu1 %v3050_v53 }
  0x7e   :  { %687 = vperm.xlu1 %1715, %v1844_v2  }
  0x80   :  { %695 = vperm.xlu0 %1749, %v1839_v1  }
  0x82   :  { %1716 = vset.pattern.permute.xlu1 %v3054_v19 }
  0x83   :  { %791 = vperm.xlu1 %1716, %v1844_v2  }
  0x84   :  { %731 = vperm.xlu0 %1749, %v1899_v11  }
  0x87   :  { %823 = vperm.xlu1 %1716, %v1892_v10  }
  0x88   :  { %707 = vperm.xlu0 %1749, %v1863_v5  }
  0x8b   :  { %1717 = vset.pattern.permute.xlu1 %v3060_v20 }
  0x8c   :  { %379 = vperm.xlu1 %1717, %v1856_v4   ;;  %743 = vperm.xlu0 %1749, %v1928_v16   ;;  %v1642_v16 = vpack.c.bf16 %v1237_v44, %v1235_v43  ;;  %v126_v44 = vlaneseq }
  0x8e   :  { %1690 = vmatpush1.bf16.msra.mxu1 %v1642_v16  ;;  %1643 = vmatpush1.bf16.msra.mxu0 %v1642_v16  ;;  %v2035_v49 = vshrl.u32 %v126_v44, 7 }
  0x8f   :  { %1675 = vmatprep.subr.bf16.mxu1 %v1644_v52  ;;  %1645 = vmatprep.subr.bf16.mxu0 %v1644_v52 }
  0x90   :  { %411 = vperm.xlu1 %1717, %v1887_v9   ;;  %1753 = vset.pattern.permute.xlu0 %v3056_v18  ;;  %v2045_v52 = vsub.s32 0, %v2035_v49 }
  0x91   :  { %275 = vperm.xlu0 %1753, %v1856_v4  }
  0x92   :  { %1691 = vmatpush1.bf16.msra.mxu1 %v1646_v54  ;;  %1647 = vmatpush1.bf16.msra.mxu0 %v1646_v54  ;;  %3102 = vst [vmem:[#allocation5_spill] sm:$0xff] %v2045_v52  ;;  %v2048_v54 = vsub.s32 1, %v2035_v49 }
  0x93   :  { %v1988_v45 = vpop.permute.xlu1 %58  ;;  %v1990_v46 = vpop.permute.xlu0 %48  ;;  %1676 = vmatprep.subr.bf16.mxu1 %v1648_v61  ;;  %1649 = vmatprep.subr.bf16.mxu0 %v1648_v61  ;;  %v2072_v61 = vrot.slane %v2058_v57, %v2045_v52 }
  0x94   :  { %1718 = vset.pattern.permute.xlu1 %v3058_v33  ;;  %3103 = vst [vmem:[#allocation6_spill] sm:$0xff] %v2048_v54  ;;  %v2080_v17 = vrot.slane %v2058_v57, %v2048_v54 }
  0x95   :  { %515 = vperm.xlu1 %1718, %v1887_v9   ;;  %287 = vperm.xlu0 %1753, %v1868_v6  }
  0x96   :  { %1692 = vmatpush1.bf16.msra.mxu1 %v1650_v62  ;;  %1651 = vmatpush1.bf16.msra.mxu0 %v1650_v62 }
  0x97   :  { %v1995_v55 = vpop.permute.xlu1 %63  ;;  %v1997_v56 = vpop.permute.xlu0 %53  ;;  %1677 = vmatprep.subr.bf16.mxu1 %v1652_v24  ;;  %1653 = vmatprep.subr.bf16.mxu0 %v1652_v24 }
  0x98   :  { %v141_v24 = vmul.f32 %v2072_v61, %v1995_v55 }
  0x99   :  { %1719 = vset.pattern.permute.xlu1 %v3052_v48  ;;  %295 = vperm.xlu0 %1753, %v1880_v8  }
  0x9a   :  { %587 = vperm.xlu1 %1719, %v1856_v4   ;;  %1693 = vmatpush1.bf16.msra.mxu1 %v1654_v25 }
  0x9b   :  { %v2002_v63 = vpop.permute.xlu1 %73  ;;  %v2004_v0 = vpop.permute.xlu0 %68  ;;  %1678 = vmatprep.subr.bf16.mxu1 %v1656_v30  ;;  %1655 = vmatpush1.bf16.msra.mxu0 %v1654_v25 }
  0x9c   :  { %1657 = vmatprep.subr.bf16.mxu0 %v1656_v30  ;;  %v143_v30 = vmul.f32 %v2072_v61, %v2004_v0 }
  0x9d   :  { %303 = vperm.xlu0 %1753, %v1892_v10   ;;  %v1253_v10 = vld [vmem:[#allocation2 + $0x1d0] sm:$0xff] }
  0x9e   :  { %1720 = vset.pattern.permute.xlu1 %v3050_v53  ;;  %v1658_v32 = vpack.c.bf16 %v1253_v10, %v1251_v31 }
  0x9f   :  { %v2008_v26 = vpop.permute.xlu1 %83  ;;  %691 = vperm.xlu1 %1720, %v1856_v4   ;;  %v2011_v27 = vpop.permute.xlu0 %78 }
  0xa0   :  { %1694 = vmatpush1.bf16.msra.mxu1 %v1658_v32  ;;  %1659 = vmatpush1.bf16.msra.mxu0 %v1658_v32  ;;  %v145_v32 = vmul.f32 %v2072_v61, %v2002_v63  ;;  %v147_v44 = vmul.f32 %v2072_v61, %v2011_v27 }
  0xa1   :  { %307 = vperm.xlu0 %1753, %v1887_v9   ;;  %1679 = vmatprep.subr.bf16.mxu1 %v1660_v38 }
  0xa2   :  { %1661 = vmatprep.subr.bf16.mxu0 %v1660_v38 }
  0xa3   :  { %v2014_v34 = vpop.permute.xlu1 %93  ;;  %723 = vperm.xlu1 %1720, %v1887_v9   ;;  %v2017_v35 = vpop.permute.xlu0 %88 }
  0xa4   :  { %1695 = vmatpush1.bf16.msra.mxu1 %v1662_v41  ;;  %1663 = vmatpush1.bf16.msra.mxu0 %v1662_v41 }
  0xa5   :  { %319 = vperm.xlu0 %1753, %v1916_v14  }
  0xa7   :  { %v2020_v42 = vpop.permute.xlu1 %103  ;;  %1722 = vset.pattern.permute.xlu1 %v3054_v19  ;;  %v2023_v43 = vpop.permute.xlu0 %98 }
  0xa8   :  { %827 = vperm.xlu1 %1722, %v1887_v9  }
  0xa9   :  { %331 = vperm.xlu0 %1753, %v1923_v15  }
  0xab   :  { %v2027_v16 = vpop.permute.xlu1 %113  ;;  %v2029_v47 = vpop.permute.xlu0 %108 }
  0xac   :  { %1723 = vset.pattern.permute.xlu1 %v3056_v18 }
  0xad   :  { %311 = vperm.xlu1 %1723, %v1904_v12   ;;  %1755 = vset.pattern.permute.xlu0 %v3058_v33 }
  0xae   :  { %483 = vperm.xlu0 %1755, %v1856_v4   ;;  %v2053_v4 = vld [vmem:[%s3048_s2] sm:$0xff] }
  0xaf   :  { %v2037_v50 = vpop.permute.xlu1 %123  ;;  %v2039_v51 = vpop.permute.xlu0 %118  ;;  %v2068_v60 = vrot.slane %v2053_v4, %v2045_v52  ;;  %v2076_v62 = vrot.slane %v2053_v4, %v2048_v54 }
  0xb1   :  { %1724 = vset.pattern.permute.xlu1 %v3060_v20  ;;  %v140_v23 = vmul.f32 %v2068_v60, %v1995_v55  ;;  %v142_v29 = vmul.f32 %v2068_v60, %v2004_v0  ;;  %v144_v55 = vmul.f32 %v2068_v60, %v2002_v63  ;;  %v146_v41 = vmul.f32 %v2068_v60, %v2011_v27 }
  0xb2   :  { %415 = vperm.xlu1 %1724, %v1904_v12   ;;  %519 = vperm.xlu0 %1755, %v1904_v12  }
  0xb4   :  { %v2060_v58 = vpop.permute.xlu1 %171  ;;  %v2062_v59 = vpop.permute.xlu0 %167 }
  0xb6   :  { %1725 = vset.pattern.permute.xlu1 %v3058_v33  ;;  %495 = vperm.xlu0 %1755, %v1868_v6  }
  0xb7   :  { %487 = vperm.xlu1 %1725, %v1839_v1  }
  0xb8   :  { %v2083_v21 = vpop.permute.xlu1 %175  ;;  %v180_v22 = vpop.permute.xlu0 %179 }
  0xb9   :  { %v244_v25 = vmul.f32 %v2076_v62, %v180_v22  ;;  %v245_v28 = vmul.f32 %v2080_v17, %v180_v22 }
  0xba   :  { %531 = vperm.xlu0 %1755, %v1911_v13  }
  0xbb   :  { %v2096_v31 = vadd.f32 %v244_v25, %v140_v23  ;;  %v2098_v10 = vadd.f32 %v245_v28, %v141_v24  ;;  %1726 = vset.pattern.permute.xlu1 %v3052_v48  ;;  %v148_v25 = vmul.f32 %v2068_v60, %v2008_v26  ;;  %v149_v28 = vmul.f32 %v2072_v61, %v2008_v26 }
  0xbc   :  { %v184_v36 = vpop.permute.xlu1 %183  ;;  %591 = vperm.xlu1 %1726, %v1839_v1   ;;  %v188_v37 = vpop.permute.xlu0 %187 }
  0xbd   :  { %3104 = vst [vmem:[#allocation7_spill] sm:$0xff] %v2096_v31  ;;  %3105 = vst [vmem:[#allocation8_spill] sm:$0xff] %v2098_v10  ;;  %v246_v38 = vmul.f32 %v2076_v62, %v184_v36  ;;  %v247_v0 = vmul.f32 %v2080_v17, %v184_v36  ;;  %v248_v39 = vmul.f32 %v2076_v62, %v188_v37  ;;  %v544_v10 = vsub.s32 4, %v2035_v49 }
  0xbe   :  { %v249_v40 = vmul.f32 %v2080_v17, %v188_v37  ;;  %507 = vperm.xlu0 %1755, %v1875_v7  }
  0xbf   :  { %v2115_v63 = vadd.f32 %v246_v38, %v142_v29  ;;  %v2117_v22 = vadd.f32 %v247_v0, %v143_v30  ;;  %v2119_v23 = vadd.f32 %v248_v39, %v144_v55 }
  0xc0   :  { %v2121_v24 = vadd.f32 %v249_v40, %v145_v32  ;;  %v192_v36 = vpop.permute.xlu1 %191  ;;  %623 = vperm.xlu1 %1726, %v1904_v12   ;;  %v196_v27 = vpop.permute.xlu0 %195 }
  0xc1   :  { %3106 = vst [vmem:[#allocation9_spill] sm:$0xff] %v2115_v63  ;;  %3107 = vst [vmem:[#allocation10_spill] sm:$0xff] %v2117_v22  ;;  %v250_v37 = vmul.f32 %v2076_v62, %v192_v36  ;;  %v251_v29 = vmul.f32 %v2080_v17, %v192_v36  ;;  %v252_v30 = vmul.f32 %v2076_v62, %v196_v27 }
  0xc2   :  { %v253_v55 = vmul.f32 %v2080_v17, %v196_v27  ;;  %1757 = vset.pattern.permute.xlu0 %v3052_v48 }
  0xc3   :  { %v2133_v32 = vadd.f32 %v250_v37, %v146_v41  ;;  %v2135_v38 = vadd.f32 %v251_v29, %v147_v44  ;;  %v2137_v0 = vadd.f32 %v252_v30, %v148_v25  ;;  %583 = vperm.xlu0 %1757, %v1844_v2   ;;  %v156_v25 = vmul.f32 %v2068_v60, %v2020_v42 }
  0xc4   :  { %v2139_v26 = vadd.f32 %v253_v55, %v149_v28  ;;  %v2142_v39 = vpop.permute.xlu1 %199  ;;  %1727 = vset.pattern.permute.xlu1 %v3050_v53  ;;  %v2145_v40 = vpop.permute.xlu0 %203  ;;  %v157_v28 = vmul.f32 %v2072_v61, %v2020_v42  ;;  %v160_v42 = vmul.f32 %v2068_v60, %v2027_v16  ;;  %v161_v29 = vmul.f32 %v2072_v61, %v2027_v16 }
  0xc5   :  { %3108 = vst [vmem:[#allocation11_spill] sm:$0xff] %v2133_v32  ;;  %3109 = vst [vmem:[#allocation12_spill] sm:$0xff] %v2135_v38  ;;  %727 = vperm.xlu1 %1727, %v1904_v12   ;;  %v159_v12 = vmul.f32 %v2072_v61, %v2029_v47 }
  0xc6   :  { %3110 = vst [vmem:[#allocation13_spill] sm:$0xff] %v2137_v0  ;;  %3111 = vst [vmem:[#allocation14_spill] sm:$0xff] %v2139_v26 }
  0xc7   :  { %619 = vperm.xlu0 %1757, %v1887_v9   ;;  %v158_v9 = vmul.f32 %v2068_v60, %v2029_v47 }
  0xc8   :  { %v2149_v41 = vpop.permute.xlu1 %207  ;;  %v212_v44 = vpop.permute.xlu0 %211 }
  0xc9   :  { %v260_v2 = vmul.f32 %v2076_v62, %v212_v44  ;;  %v261_v36 = vmul.f32 %v2080_v17, %v212_v44  ;;  %1728 = vset.pattern.permute.xlu1 %v3054_v19 }
  0xca   :  { %799 = vperm.xlu1 %1728, %v1839_v1  }
  0xcb   :  { %v2163_v27 = vadd.f32 %v260_v2, %v156_v25  ;;  %v2165_v37 = vadd.f32 %v261_v36, %v157_v28  ;;  %595 = vperm.xlu0 %1757, %v1851_v3   ;;  %v162_v28 = vmul.f32 %v2068_v60, %v2039_v51  ;;  %v163_v2 = vmul.f32 %v2072_v61, %v2039_v51 }
  0xcc   :  { %v216_v30 = vpop.permute.xlu1 %215  ;;  %v220_v1 = vpop.permute.xlu0 %219 }
  0xcd   :  { %3112 = vst [vmem:[#allocation15_spill] sm:$0xff] %v2163_v27  ;;  %3113 = vst [vmem:[#allocation16_spill] sm:$0xff] %v2165_v37  ;;  %v262_v55 = vmul.f32 %v2076_v62, %v216_v30  ;;  %v263_v44 = vmul.f32 %v2080_v17, %v216_v30  ;;  %v264_v47 = vmul.f32 %v2076_v62, %v220_v1 }
  0xce   :  { %v265_v25 = vmul.f32 %v2080_v17, %v220_v1  ;;  %1729 = vset.pattern.permute.xlu1 %v3056_v18  ;;  %v164_v30 = vmul.f32 %v2068_v60, %v2037_v50  ;;  %v165_v1 = vmul.f32 %v2072_v61, %v2037_v50 }
  0xcf   :  { %v2181_v36 = vadd.f32 %v262_v55, %v158_v9  ;;  %v2183_v16 = vadd.f32 %v263_v44, %v159_v12  ;;  %v2185_v53 = vadd.f32 %v264_v47, %v160_v42  ;;  %315 = vperm.xlu1 %1729, %v1899_v11   ;;  %631 = vperm.xlu0 %1757, %v1916_v14  }
  0xd0   :  { %v2187_v48 = vadd.f32 %v265_v25, %v161_v29  ;;  %v224_v19 = vpop.permute.xlu1 %223  ;;  %v228_v51 = vpop.permute.xlu0 %227 }
  0xd1   :  { %3114 = vst [vmem:[#allocation17_spill] sm:$0xff] %v2181_v36  ;;  %3115 = vst [vmem:[#allocation18_spill] sm:$0xff] %v2183_v16  ;;  %v266_v9 = vmul.f32 %v2076_v62, %v224_v19  ;;  %v267_v12 = vmul.f32 %v2080_v17, %v224_v19  ;;  %v268_v42 = vmul.f32 %v2076_v62, %v228_v51  ;;  %v3133_v36 = vmov 4  }
  0xd2   :  { %3116 = vst [vmem:[#allocation19_spill] sm:$0xff] %v2185_v53  ;;  %3117 = vst [vmem:[#allocation20_spill] sm:$0xff] %v2187_v48  ;;  %v269_v29 = vmul.f32 %v2080_v17, %v228_v51  ;;  %v3125_v51 = vmov 5   ;;  %v3129_v53 = vmov 3  }
  0xd3   :  { %v2199_v55 = vadd.f32 %v266_v9, %v162_v28  ;;  %v2201_v44 = vadd.f32 %v267_v12, %v163_v2  ;;  %v2203_v47 = vadd.f32 %v268_v42, %v164_v30  ;;  %1730 = vset.pattern.permute.xlu1 %v3060_v20  ;;  %607 = vperm.xlu0 %1757, %v1880_v8   ;;  %v3122_v30 = vmov 7  }
  0xd4   :  { %v2205_v25 = vadd.f32 %v269_v29, %v165_v1  ;;  %387 = vperm.xlu1 %1730, %v1851_v3   ;;  %v3128_v42 = vmov 6   ;;  %v440_v20 = vsub.s32 3, %v2035_v49 }
  0xd5   :  { %3118 = vst [vmem:[#allocation21_spill] sm:$0xff] %v2199_v55  ;;  %3119 = vst [vmem:[#allocation22_spill] sm:$0xff] %v2201_v44  ;;  %v2210_v50 = vpop.permute.xlu1 %271  ;;  %v2212_v19 = vpop.permute.xlu0 %795 }
  0xd6   :  { %3120 = vst [vmem:[#allocation23_spill] sm:$0xff] %v2203_v47  ;;  %3121 = vst [vmem:[#allocation24_spill] sm:$0xff] %v2205_v25  ;;  %v2258_v47 = vrot.slane %v2053_v4, %v440_v20 }
  0xd7   :  { %643 = vperm.xlu0 %1757, %v1923_v15  }
  0xd8   :  { %1731 = vset.pattern.permute.xlu1 %v3058_v33 }
  0xd9   :  { %491 = vperm.xlu1 %1731, %v1851_v3   ;;  %v2217_v28 = vpop.permute.xlu1 %279  ;;  %v2219_v2 = vpop.permute.xlu0 %831 }
  0xdb   :  { %1761 = vset.pattern.permute.xlu0 %v3122_v30 }
  0xdc   :  { %819 = vperm.xlu0 %1761, %v1875_v7   ;;  %v336_v7 = vsub.s32 2, %v2035_v49 }
  0xdd   :  { %523 = vperm.xlu1 %1731, %v1899_v11   ;;  %v2223_v1 = vpop.permute.xlu1 %283  ;;  %v2225_v8 = vpop.permute.xlu0 %807 }
  0xde   :  { %3123 = vst [vmem:[#allocation25_spill] sm:$0xff] %v2223_v1  ;;  %3124 = vst [vmem:[#allocation26_spill] sm:$0xff] %v2225_v8  ;;  %v2255_v25 = vrot.slane %v2058_v57, %v336_v7 }
  0xe1   :  { %1732 = vset.pattern.permute.xlu1 %v3125_v51  ;;  %v292_v9 = vpop.permute.xlu1 %291  ;;  %v2229_v15 = vpop.permute.xlu0 %843 }
  0xe2   :  { %3126 = vst [vmem:[#allocation27_spill] sm:$0xff] %v2229_v15  ;;  %627 = vperm.xlu1 %1732, %v1899_v11   ;;  %v353_v44 = vmul.f32 %v2255_v25, %v292_v9 }
  0xe5   :  { %v2232_v12 = vpop.permute.xlu1 %299 }
  0xe6   :  { %3127 = vst [vmem:[#allocation28_spill] sm:$0xff] %v2232_v12  ;;  %1733 = vset.pattern.permute.xlu1 %v3128_v42  ;;  %v2235_v29 = vpop.permute.xlu0 %407  ;;  %v2252_v12 = vrot.slane %v2053_v4, %v336_v7 }
  0xe7   :  { %699 = vperm.xlu1 %1733, %v1851_v3  }
  0xe8   :  { %v352_v32 = vmul.f32 %v2252_v12, %v292_v9 }
  0xea   :  { %v2238_v18 = vpop.permute.xlu1 %375  ;;  %v2240_v33 = vpop.permute.xlu0 %383 }
  0xeb   :  { %1734 = vset.pattern.permute.xlu1 %v3122_v30 }
  0xec   :  { %803 = vperm.xlu1 %1734, %v1851_v3   ;;  %v2261_v3 = vrot.slane %v2058_v57, %v440_v20 }
  0xee   :  { %v2246_v26 = vpop.permute.xlu0 %419 }
  0xef   :  { %v2248_v0 = vpop.permute.xlu1 %479 }
  0xf0   :  { %835 = vperm.xlu1 %1734, %v1899_v11  }
  0xf2   :  { %v396_v38 = vpop.permute.xlu0 %395 }
  0xf3   :  { %v456_v55 = vmul.f32 %v2258_v47, %v396_v38  ;;  %v457_v11 = vmul.f32 %v2261_v3, %v396_v38  ;;  %v2267_v48 = vpop.permute.xlu1 %511 }
  0xf4   :  { %1735 = vset.pattern.permute.xlu1 %v3129_v53 }
  0xf5   :  { %v936_v7 = vadd.f32 %v456_v55, %v352_v32  ;;  %v937_v15 = vadd.f32 %v457_v11, %v353_v44  ;;  %391 = vperm.xlu1 %1735, %v1868_v6  }
  0xf6   :  { %v2271_v8 = vpop.permute.xlu0 %431 }
  0xf7   :  { %3130 = vst [vmem:[#allocation29_spill] sm:$0xff] %v2271_v8  ;;  %v2274_v20 = vadd.f32 %v936_v7, %v2119_v23  ;;  %v2277_v16 = vadd.f32 %v937_v15, %v2121_v24  ;;  %v648_v8 = vsub.s32 5, %v2035_v49 }
  0xf8   :  { %v616_v9 = vpop.permute.xlu1 %615 }
  0xf9   :  { %3131 = vst [vmem:[#allocation30_spill] sm:$0xff] %v2274_v20  ;;  %3132 = vst [vmem:[#allocation31_spill] sm:$0xff] %v2277_v16  ;;  %423 = vperm.xlu1 %1735, %v1916_v14   ;;  %v856_v16 = vsub.s32 7, %v2035_v49 }
  0xfb   :  { %v720_v38 = vpop.permute.xlu0 %719  ;;  %v2318_v31 = vrot.slane %v2053_v4, %v856_v16  ;;  %v2327_v1 = vrot.slane %v2058_v57, %v856_v16  ;;  %v2344_v16 = vrot.slane %v2053_v4, %v544_v10 }
  0xfd   :  { %1736 = vset.pattern.permute.xlu1 %v3133_v36  ;;  %v2281_v22 = vpop.permute.xlu1 %687 }
  0xfe   :  { %3134 = vst [vmem:[#allocation32_spill] sm:$0xff] %v2281_v22  ;;  %527 = vperm.xlu1 %1736, %v1916_v14  }
  0xff   :  { %v2284_v32 = vpop.permute.xlu0 %695 }
 0x100   :  { %3135 = vst [vmem:[#allocation33_spill] sm:$0xff] %v2284_v32 }
 0x102   :  { %1737 = vset.pattern.permute.xlu1 %v3125_v51  ;;  %v2287_v55 = vpop.permute.xlu1 %791 }
 0x103   :  { %3136 = vst [vmem:[#allocation34_spill] sm:$0xff] %v2287_v55  ;;  %599 = vperm.xlu1 %1737, %v1868_v6   ;;  %v2290_v23 = vpop.permute.xlu0 %731  ;;  %v566_v55 = vmul.f32 %v2344_v16, %v2267_v48 }
 0x104   :  { %3137 = vst [vmem:[#allocation35_spill] sm:$0xff] %v2290_v23 }
 0x106   :  { %v824_v24 = vpop.permute.xlu1 %823 }
 0x107   :  { %1738 = vset.pattern.permute.xlu1 %v3128_v42  ;;  %v2293_v44 = vpop.permute.xlu0 %707 }
 0x108   :  { %3138 = vst [vmem:[#allocation36_spill] sm:$0xff] %v2293_v44  ;;  %703 = vperm.xlu1 %1738, %v1868_v6   ;;  %v752_v6 = vsub.s32 6, %v2035_v49 }
 0x10a   :  { %v2324_v23 = vrot.slane %v2053_v4, %v752_v6  ;;  %v2333_v37 = vrot.slane %v2058_v57, %v752_v6  ;;  %v254_v6 = vmul.f32 %v2076_v62, %v2142_v39 }
 0x10b   :  { %v2296_v15 = vpop.permute.xlu1 %379  ;;  %v2298_v11 = vpop.permute.xlu0 %743 }
 0x10c   :  { %3139 = vst [vmem:[#allocation37_spill] sm:$0xff] %v2296_v15  ;;  %3140 = vst [vmem:[#allocation38_spill] sm:$0xff] %v2298_v11  ;;  %735 = vperm.xlu1 %1738, %v1916_v14   ;;  %v3145_v11 = vmov 2   ;;  %v774_v27 = vmul.f32 %v2324_v23, %v720_v38  ;;  %v150_v15 = vmul.f32 %v2068_v60, %v2017_v35 }
 0x10d   :  { %3147 = vst [vmem:[#allocation44_spill] sm:$0xff] %v2324_v23  ;;  %3149 = vst [vmem:[#allocation46_spill] sm:$0xff] %v2333_v37 }
 0x10f   :  { %v2301_v7 = vpop.permute.xlu1 %411 }
 0x110   :  { %3141 = vst [vmem:[#allocation39_spill] sm:$0xff] %v2301_v7  ;;  %1739 = vset.pattern.permute.xlu1 %v3122_v30  ;;  %v2304_v20 = vpop.permute.xlu0 %275 }
 0x111   :  { %3142 = vst [vmem:[#allocation40_spill] sm:$0xff] %v2304_v20  ;;  %839 = vperm.xlu1 %1739, %v1916_v14   ;;  %v2321_v14 = vrot.slane %v2053_v4, %v648_v8  ;;  %v151_v4 = vmul.f32 %v2072_v61, %v2017_v35 }
 0x113   :  { %3146 = vst [vmem:[#allocation43_spill] sm:$0xff] %v2321_v14  ;;  %v670_v32 = vmul.f32 %v2321_v14, %v616_v9 }
 0x114   :  { %v2310_v44 = vpop.permute.xlu1 %515  ;;  %v2312_v63 = vpop.permute.xlu0 %287 }
 0x115   :  { %3143 = vst [vmem:[#allocation41_spill] sm:$0xff] %v2310_v44  ;;  %3144 = vst [vmem:[#allocation42_spill] sm:$0xff] %v2312_v63  ;;  %1740 = vset.pattern.permute.xlu1 %v3145_v11  ;;  %v2330_v63 = vrot.slane %v2058_v57, %v648_v8  ;;  %v878_v44 = vmul.f32 %v2318_v31, %v824_v24  ;;  %v775_v8 = vmul.f32 %v2333_v37, %v720_v38 }
 0x116   :  { %323 = vperm.xlu1 %1740, %v1911_v13   ;;  %v879_v11 = vmul.f32 %v2327_v1, %v824_v24  ;;  %v255_v38 = vmul.f32 %v2080_v17, %v2142_v39  ;;  %v2362_v24 = vrot.slane %v2058_v57, %v544_v10  ;;  %v1597_v57 = vld [vmem:[%s3048_s2 + $0x10] ss:$8 sm:$0x3]  ;;  %v910_v10 = vadd.f32 %v254_v6, %v150_v15 }
 0x117   :  { %3148 = vst [vmem:[#allocation45_spill] sm:$0xff] %v2330_v63  ;;  %v1006_v39 = vadd.f32 %v670_v32, %v566_v55  ;;  %v2386_v32 = vrot.slane %v1597_v57, %v2048_v54  ;;  %v343_v54 = vmul.f32 %v2255_v25, %v2210_v50 }
 0x118   :  { %v2335_v49 = vpop.permute.xlu0 %295  ;;  %v567_v35 = vmul.f32 %v2362_v24, %v2267_v48  ;;  %v1039_v37 = vadd.f32 %v879_v11, %v775_v8  ;;  %v2381_v8 = vrot.slane %v1597_v57, %v2045_v52  ;;  %v137_v57 = vmul.f32 %v2072_v61, %v1997_v56 }
 0x119   :  { %3150 = vst [vmem:[#allocation47_spill] sm:$0xff] %v2335_v49  ;;  %v2339_v7 = vpop.permute.xlu1 %587  ;;  %v462_v49 = vmul.f32 %v2258_v47, %v2235_v29 }
 0x11a   :  { %3151 = vst [vmem:[#allocation48_spill] sm:$0xff] %v2339_v7  ;;  %1741 = vset.pattern.permute.xlu1 %v3129_v53  ;;  %v463_v7 = vmul.f32 %v2261_v3, %v2235_v29  ;;  %v671_v53 = vmul.f32 %v2330_v63, %v616_v9  ;;  %v1038_v29 = vadd.f32 %v878_v44, %v774_v27  ;;  %3153 = vst [vmem:[#allocation50_spill] sm:$0xff] %v2381_v8 }
 0x11b   :  { %427 = vperm.xlu1 %1741, %v1911_v13   ;;  %v911_v27 = vadd.f32 %v255_v38, %v151_v4  ;;  %v134_v4 = vmul.f32 %v2068_v60, %v1990_v46  ;;  %v135_v38 = vmul.f32 %v2072_v61, %v1990_v46  ;;  %v154_v46 = vmul.f32 %v2068_v60, %v2023_v43 }
 0x11c   :  { %v304_v20 = vpop.permute.xlu0 %303  ;;  %v1007_v44 = vadd.f32 %v671_v53, %v567_v35  ;;  %v1070_v48 = vadd.f32 %v1038_v29, %v1006_v39  ;;  %v136_v35 = vmul.f32 %v2068_v60, %v1997_v56  ;;  %v1764_v39 = vld [vmem:[%s3046_s0 + $0x68] sm:$0xff]  ;;  %v240_v56 = vmul.f32 %v2076_v62, %v2060_v58 }
 0x11d   :  { %v358_v14 = vmul.f32 %v2252_v12, %v304_v20  ;;  %v359_v13 = vmul.f32 %v2255_v25, %v304_v20 }
 0x11e   :  { %v2371_v23 = vpop.permute.xlu1 %691  ;;  %v1071_v15 = vadd.f32 %v1039_v37, %v1007_v44  ;;  %v138_v37 = vmul.f32 %v2068_v60, %v1988_v45  ;;  %v239_v44 = vmul.f32 %v2080_v17, %v2062_v59 }
 0x11f   :  { %3152 = vst [vmem:[#allocation49_spill] sm:$0xff] %v2371_v23  ;;  %v942_v9 = vadd.f32 %v462_v49, %v358_v14  ;;  %v943_v63 = vadd.f32 %v463_v7, %v359_v13  ;;  %1742 = vset.pattern.permute.xlu1 %v3133_v36  ;;  %v2394_v7 = vld [vmem:[%s3046_s0 + $0x28] sm:$0xff] }
 0x120   :  { %499 = vperm.xlu1 %1742, %v1863_v5   ;;  %v2378_v20 = vpop.permute.xlu0 %307 }
 0x121   :  { %v974_v11 = vadd.f32 %v942_v9, %v910_v10  ;;  %v975_v22 = vadd.f32 %v943_v63, %v911_v27  ;;  %v152_v10 = vmul.f32 %v2068_v60, %v2014_v34  ;;  %v155_v9 = vmul.f32 %v2072_v61, %v2023_v43 }
 0x122   :  { %v2383_v23 = vpop.permute.xlu1 %723  ;;  %v241_v27 = vmul.f32 %v2080_v17, %v2060_v58  ;;  %v450_v60 = vmul.f32 %v2258_v47, %v2240_v33  ;;  %v242_v43 = vmul.f32 %v2076_v62, %v2083_v21  ;;  %v243_v58 = vmul.f32 %v2080_v17, %v2083_v21 }
 0x123   :  { %v1102_v55 = vadd.f32 %v1070_v48, %v974_v11  ;;  %v1103_v5 = vadd.f32 %v1071_v15, %v975_v22  ;;  %v139_v22 = vmul.f32 %v2072_v61, %v1988_v45  ;;  %v153_v45 = vmul.f32 %v2072_v61, %v2014_v34 }
 0x124   :  { %1743 = vset.pattern.permute.xlu1 %v3125_v51  ;;  %v2389_v53 = vpop.permute.xlu0 %319  ;;  %v238_v34 = vmul.f32 %v2076_v62, %v2062_v59  ;;  %v446_v48 = vmul.f32 %v2258_v47, %v2238_v18  ;;  %v256_v61 = vmul.f32 %v2076_v62, %v2145_v40  ;;  %v451_v11 = vmul.f32 %v2261_v3, %v2240_v33 }
 0x125   :  { %3154 = vst [vmem:[#allocation51_spill] sm:$0xff] %v2389_v53  ;;  %603 = vperm.xlu1 %1743, %v2394_v7   ;;  %v1147_v14 = vadd.f32 %v2381_v8, %v1102_v55  ;;  %v1148_v63 = vadd.f32 %v2386_v32, %v1103_v5  ;;  %v257_v15 = vmul.f32 %v2080_v17, %v2145_v40 }
 0x126   :  { %v342_v55 = vmul.f32 %v2252_v12, %v2210_v50  ;;  %v346_v5 = vmul.f32 %v2252_v12, %v2217_v28  ;;  %v447_v21 = vmul.f32 %v2261_v3, %v2238_v18  ;;  %v258_v33 = vmul.f32 %v2076_v62, %v2149_v41 }
 0x127   :  { %v2401_v49 = vpop.permute.xlu1 %827  ;;  %v1179_v6 = vmax.f32 %v1147_v14, 0.0  ;;  %v1180_v29 = vmax.f32 %v1148_v63, 0.0  ;;  %v2457_v63 = vadd.f32 %v240_v56, %v136_v35  ;;  %v259_v40 = vmul.f32 %v2080_v17, %v2149_v41 }
 0x128   :  { %v2409_v13 = vpop.permute.xlu0 %331  ;;  %v926_v18 = vadd.f32 %v446_v48, %v342_v55  ;;  %v930_v52 = vadd.f32 %v450_v60, %v346_v5  ;;  %v895_v35 = vadd.f32 %v239_v44, %v135_v38  ;;  %v898_v56 = vadd.f32 %v242_v43, %v138_v37  ;;  %v3166_v60 = vld [vmem:[#allocation40_spill] sm:$0xff] }
 0x129   :  { %3155 = vst [vmem:[#allocation52_spill] sm:$0xff] %v2409_v13  ;;  %635 = vperm.xlu1 %1743, %v1764_v39   ;;  %1384 = vmatprep.mubr.f32.mxu1 %v1180_v29  ;;  %v894_v29 = vadd.f32 %v238_v34, %v134_v4  ;;  %v2467_v13 = vadd.f32 %v241_v27, %v137_v57 }
 0x12a   :  { %1385 = vmatmul.mubr.f32.vlgmr.msra.gmra.mrb[0].mxu1 %v1179_v6  ;;  %v347_v6 = vmul.f32 %v2255_v25, %v2217_v28  ;;  %v2469_v62 = vadd.f32 %v256_v61, %v152_v10  ;;  %v2471_v8 = vadd.f32 %v257_v15, %v153_v45  ;;  %v927_v17 = vadd.f32 %v447_v21, %v343_v54  ;;  %v3167_v61 = vld [vmem:[#allocation33_spill] sm:$0xff] }
 0x12b   :  { %v2475_v4 = vadd.f32 %v258_v33, %v154_v46  ;;  %v864_v50 = vmul.f32 %v2318_v31, %v2212_v19  ;;  %v865_v37 = vmul.f32 %v2327_v1, %v2212_v19  ;;  %v2490_v54 = vmul.f32 %v2327_v1, %v2219_v2  ;;  %v3160_v46 = vld [vmem:[#allocation32_spill] sm:$0xff]  ;;  %v3171_v33 = vld [vmem:[#allocation37_spill] sm:$0xff] }
 0x12c   :  { %v2446_v59 = vpop.permute.xlu1 %311  ;;  %v931_v53 = vadd.f32 %v451_v11, %v347_v6  ;;  %v2492_v38 = vadd.f32 %v926_v18, %v894_v29  ;;  %v2494_v57 = vadd.f32 %v930_v52, %v898_v56  ;;  %v2501_v19 = vmul.f32 %v2258_v47, %v2246_v26  ;;  %v3172_v29 = vld [vmem:[#allocation49_spill] sm:$0xff]  ;;  %v2555_v56 = vld [vmem:[%s3046_s0 + $0x70] sm:$0xff] }
 0x12d   :  { %1744 = vset.pattern.permute.xlu1 %v3128_v42  ;;  %v484_v14 = vpop.permute.xlu0 %483  ;;  %v899_v42 = vadd.f32 %v243_v58, %v139_v22  ;;  %v2486_v22 = vmul.f32 %v2318_v31, %v2219_v2  ;;  %v2505_v45 = vmul.f32 %v2261_v3, %v2246_v26  ;;  %v2509_v2 = vmul.f32 %v2344_v16, %v2248_v0  ;;  %v3165_v26 = vld [vmem:[#allocation34_spill] sm:$0xff] }
 0x12e   :  { %739 = vperm.xlu1 %1744, %v1764_v39   ;;  %v2477_v39 = vadd.f32 %v259_v40, %v155_v9  ;;  %3156 = vst [vmem:[#allocation53_spill] sm:$0xff] %v2494_v57  ;;  %3158 = vst [vmem:[#allocation55_spill] sm:$0xff] %v2501_v19  ;;  %v2513_v52 = vmul.f32 %v2362_v24, %v2248_v0  ;;  %v2521_v34 = vadd.f32 %v927_v17, %v895_v35  ;;  %v3170_v21 = vmov 2   ;;  %v3174_v17 = vld [vmem:[#allocation43_spill] sm:$0xff] }
 0x12f   :  { %v2497_v10 = vadd.f32 %v931_v53, %v899_v42  ;;  %3159 = vst [vmem:[#allocation56_spill] sm:$0xff] %v2505_v45  ;;  %v3162_v53 = vld [vmem:[#allocation46_spill] sm:$0xff]  ;;  %v862_v44 = vmul.f32 %v2318_v31, %v3165_v26  ;;  %v863_v48 = vmul.f32 %v2327_v1, %v3165_v26  ;;  %v344_v0 = vmul.f32 %v2252_v12, %v3166_v60  ;;  %v3175_v26 = vld [vmem:[#allocation45_spill] sm:$0xff]  ;;  %v3176_v19 = vld [vmem:[#allocation39_spill] sm:$0xff] }
 0x130   :  { %v759_v9 = vmul.f32 %v3162_v53, %v3160_v46  ;;  %v345_v43 = vmul.f32 %v2255_v25, %v3166_v60  ;;  %v2539_v15 = vmul.f32 %v3162_v53, %v3167_v61  ;;  %v552_v55 = vmul.f32 %v2344_v16, %v484_v14 }
 0x131   :  { %v416_v41 = vpop.permute.xlu1 %415  ;;  %v2473_v28 = vpop.permute.xlu0 %519  ;;  %3157 = vst [vmem:[#allocation54_spill] sm:$0xff] %v2497_v10  ;;  %v553_v5 = vmul.f32 %v2362_v24, %v484_v14  ;;  %v448_v40 = vmul.f32 %v2258_v47, %v3171_v33  ;;  %v449_v6 = vmul.f32 %v2261_v3, %v3171_v33  ;;  %v761_v35 = vmul.f32 %v3162_v53, %v3172_v29  ;;  %v3173_v14 = vld [vmem:[#allocation48_spill] sm:$0xff] }
 0x132   :  { %1745 = vset.pattern.permute.xlu1 %v3122_v30  ;;  %3169 = vst [vmem:[#allocation34_spill] sm:$0xff] %v2539_v15  ;;  %v657_v60 = vmul.f32 %v3175_v26, %v3173_v14  ;;  %v464_v57 = vmul.f32 %v2258_v47, %v3176_v19 }
 0x133   :  { %811 = vperm.xlu1 %1745, %v2394_v7   ;;  %v3161_v7 = vld [vmem:[#allocation44_spill] sm:$0xff]  ;;  %v928_v30 = vadd.f32 %v448_v40, %v344_v0  ;;  %v929_v45 = vadd.f32 %v449_v6, %v345_v43  ;;  %v1025_v51 = vadd.f32 %v865_v37, %v761_v35  ;;  %v880_v0 = vmul.f32 %v2318_v31, %v2401_v49  ;;  %v3178_v35 = vld [vmem:[#allocation41_spill] sm:$0xff] }
 0x134   :  { %v758_v42 = vmul.f32 %v3161_v7, %v3160_v46  ;;  %3164 = vst [vmem:[#allocation44_spill] sm:$0xff] %v2521_v34  ;;  %v2535_v11 = vmul.f32 %v3161_v7, %v3167_v61  ;;  %v760_v18 = vmul.f32 %v3161_v7, %v3172_v29  ;;  %v656_v46 = vmul.f32 %v3174_v17, %v3173_v14 }
 0x135   :  { %v2519_v27 = vpop.permute.xlu0 %495  ;;  %v360_v61 = vmul.f32 %v2252_v12, %v2378_v20  ;;  %v465_v14 = vmul.f32 %v2261_v3, %v3176_v19  ;;  %v993_v15 = vadd.f32 %v657_v60, %v553_v5  ;;  %v881_v43 = vmul.f32 %v2327_v1, %v2401_v49  ;;  %v2586_v19 = vld [vmem:[%s3046_s0 + $0x30] sm:$0xff] }
 0x136   :  { %3163 = vst [vmem:[#allocation32_spill] sm:$0xff] %v2519_v27  ;;  %v2531_v58 = vpop.permute.xlu1 %487  ;;  %3168 = vst [vmem:[#allocation46_spill] sm:$0xff] %v2535_v11  ;;  %v2568_v29 = vadd.f32 %v862_v44, %v758_v42  ;;  %v2570_v27 = vadd.f32 %v863_v48, %v759_v9  ;;  %v992_v10 = vadd.f32 %v656_v46, %v552_v55  ;;  %v3177_v44 = vmov 3  }
 0x137   :  { %1747 = vset.pattern.permute.xlu1 %v3170_v21  ;;  %v361_v21 = vmul.f32 %v2255_v25, %v2378_v20  ;;  %v1024_v34 = vadd.f32 %v864_v50, %v760_v18  ;;  %v466_v20 = vmul.f32 %v2258_v47, %v416_v41  ;;  %v467_v42 = vmul.f32 %v2261_v3, %v416_v41 }
 0x138   :  { %327 = vperm.xlu1 %1747, %v2555_v56   ;;  %v944_v9 = vadd.f32 %v464_v57, %v360_v61  ;;  %v960_v41 = vadd.f32 %v928_v30, %v2457_v63  ;;  %v961_v37 = vadd.f32 %v929_v45, %v2467_v13  ;;  %v362_v57 = vmul.f32 %v2252_v12, %v2446_v59 }
 0x139   :  { %v2566_v33 = vpop.permute.xlu0 %531  ;;  %v945_v48 = vadd.f32 %v465_v14, %v361_v21  ;;  %v363_v55 = vmul.f32 %v2255_v25, %v2446_v59  ;;  %v776_v49 = vmul.f32 %v3161_v7, %v2383_v23  ;;  %v777_v5 = vmul.f32 %v3162_v53, %v2383_v23 }
 0x13a   :  { %v1056_v40 = vadd.f32 %v1024_v34, %v992_v10  ;;  %v1057_v6 = vadd.f32 %v1025_v51, %v993_v15  ;;  %v568_v30 = vmul.f32 %v2344_v16, %v3178_v35  ;;  %v569_v13 = vmul.f32 %v2362_v24, %v3178_v35 }
 0x13b   :  { %v592_v11 = vpop.permute.xlu1 %591  ;;  %v946_v63 = vadd.f32 %v466_v20, %v362_v57  ;;  %v947_v45 = vadd.f32 %v467_v42, %v363_v55  ;;  %v976_v46 = vadd.f32 %v944_v9, %v2469_v62  ;;  %v2607_v59 = vadd.f32 %v945_v48, %v2471_v8 }
 0x13c   :  { %1748 = vset.pattern.permute.xlu1 %v3177_v44  ;;  %v1040_v60 = vadd.f32 %v880_v0, %v776_v49  ;;  %v1041_v61 = vadd.f32 %v881_v43, %v777_v5  ;;  %v570_v51 = vmul.f32 %v2344_v16, %v2473_v28  ;;  %v571_v23 = vmul.f32 %v2362_v24, %v2473_v28 }
 0x13d   :  { %399 = vperm.xlu1 %1748, %v2586_v19   ;;  %v2589_v50 = vpop.permute.xlu0 %507  ;;  %v1089_v21 = vadd.f32 %v1057_v6, %v961_v37  ;;  %v1088_v14 = vadd.f32 %v1056_v40, %v960_v41  ;;  %v978_v20 = vadd.f32 %v946_v63, %v2475_v4  ;;  %v979_v42 = vadd.f32 %v947_v45, %v2477_v39 }
 0x13e   :  { %v554_v28 = vmul.f32 %v2344_v16, %v2531_v58  ;;  %v658_v9 = vmul.f32 %v3174_v17, %v592_v11  ;;  %v555_v41 = vmul.f32 %v2362_v24, %v2531_v58  ;;  %v659_v4 = vmul.f32 %v3175_v26, %v592_v11 }
 0x13f   :  { %v624_v18 = vpop.permute.xlu1 %623  ;;  %v1134_v11 = vadd.f32 %v2386_v32, %v1089_v21 }
 0x140   :  { %v674_v10 = vmul.f32 %v3174_v17, %v624_v18  ;;  %v675_v34 = vmul.f32 %v3175_v26, %v624_v18  ;;  %v994_v6 = vadd.f32 %v658_v9, %v554_v28  ;;  %v3182_v9 = vld [vmem:[#allocation46_spill] sm:$0xff] }
 0x141   :  { %1750 = vset.pattern.permute.xlu1 %v3133_v36 }
 0x142   :  { %503 = vperm.xlu1 %1750, %v2586_v19   ;;  %v584_v62 = vpop.permute.xlu0 %583  ;;  %v1010_v39 = vadd.f32 %v674_v10, %v570_v51  ;;  %v1011_v37 = vadd.f32 %v675_v34, %v571_v23  ;;  %v3179_v10 = vmov 5   ;;  %v3180_v34 = vld [vmem:[#allocation44_spill] sm:$0xff] }
 0x143   :  { %v654_v8 = vmul.f32 %v3174_v17, %v584_v62  ;;  %v655_v15 = vmul.f32 %v3175_v26, %v584_v62 }
 0x144   :  { %v728_v48 = vpop.permute.xlu1 %727 }
 0x145   :  { %v990_v0 = vadd.f32 %v654_v8, %v2509_v2  ;;  %v991_v43 = vadd.f32 %v655_v15, %v2513_v52  ;;  %v778_v57 = vmul.f32 %v3161_v7, %v728_v48  ;;  %v779_v55 = vmul.f32 %v3162_v53, %v728_v48 }
 0x146   :  { %535 = vperm.xlu1 %1750, %v2555_v56   ;;  %v620_v49 = vpop.permute.xlu0 %619  ;;  %v995_v8 = vadd.f32 %v659_v4, %v555_v41 }
 0x147   :  { %v1054_v5 = vadd.f32 %v2568_v29, %v990_v0  ;;  %v1042_v2 = vadd.f32 %v2486_v22, %v778_v57  ;;  %v1043_v52 = vadd.f32 %v2490_v54, %v779_v55  ;;  %v672_v40 = vmul.f32 %v3174_v17, %v620_v49 }
 0x148   :  { %v673_v18 = vmul.f32 %v3175_v26, %v620_v49  ;;  %v1055_v58 = vadd.f32 %v2570_v27, %v991_v43  ;;  %v3181_v27 = vld [vmem:[#allocation50_spill] sm:$0xff] }
 0x149   :  { %v1074_v35 = vadd.f32 %v1042_v2, %v1010_v39  ;;  %v1075_v63 = vadd.f32 %v1043_v52, %v1011_v37  ;;  %v1008_v45 = vadd.f32 %v672_v40, %v568_v30  ;;  %v800_v51 = vpop.permute.xlu1 %799  ;;  %v1086_v23 = vadd.f32 %v1054_v5, %v2492_v38  ;;  %v3183_v38 = vld [vmem:[#allocation34_spill] sm:$0xff] }
 0x14a   :  { %v1009_v29 = vadd.f32 %v673_v18, %v569_v13  ;;  %v866_v22 = vmul.f32 %v2318_v31, %v800_v51  ;;  %v867_v54 = vmul.f32 %v2327_v1, %v800_v51  ;;  %1751 = vset.pattern.permute.xlu1 %v3179_v10  ;;  %v1087_v62 = vadd.f32 %v1055_v58, %v3180_v34  ;;  %v3187_v18 = vld [vmem:[#allocation55_spill] sm:$0xff] }
 0x14b   :  { %v1072_v15 = vadd.f32 %v1040_v60, %v1008_v45  ;;  %639 = vperm.xlu1 %1751, %v2555_v56   ;;  %v1131_v21 = vadd.f32 %v3181_v27, %v1086_v23  ;;  %v1107_v28 = vadd.f32 %v1075_v63, %v979_v42  ;;  %v1133_v57 = vadd.f32 %v3181_v27, %v1088_v14 }
 0x14c   :  { %v1073_v30 = vadd.f32 %v1041_v61, %v1009_v29  ;;  %v1026_v48 = vadd.f32 %v866_v22, %v3182_v9  ;;  %v1027_v13 = vadd.f32 %v867_v54, %v3183_v38  ;;  %v1132_v0 = vadd.f32 %v2386_v32, %v1087_v62  ;;  %v3189_v22 = vld [vmem:[#allocation15_spill] sm:$0xff] }
 0x14d   :  { %v1163_v43 = vmax.f32 %v1131_v21, 0.0  ;;  %v1104_v55 = vadd.f32 %v1072_v15, %v976_v46  ;;  %v1106_v39 = vadd.f32 %v1074_v35, %v978_v20  ;;  %v3184_v5 = vmov 6   ;;  %v3185_v20 = vld [vmem:[#allocation54_spill] sm:$0xff]  ;;  %v3188_v35 = vld [vmem:[#allocation56_spill] sm:$0xff] }
 0x14e   :  { %v1058_v37 = vadd.f32 %v1026_v48, %v994_v6  ;;  %v1059_v41 = vadd.f32 %v1027_v13, %v995_v8  ;;  %v316_v60 = vpop.permute.xlu1 %315  ;;  %v1164_v4 = vmax.f32 %v1132_v0, 0.0  ;;  %v1105_v49 = vadd.f32 %v1073_v30, %v2607_v59  ;;  %v3186_v6 = vld [vmem:[#allocation53_spill] sm:$0xff]  ;;  %v1767_v0 = vld [vmem:[%s3046_s0 + $0x38] sm:$0xff] }
 0x14f   :  { %v364_v42 = vmul.f32 %v2252_v12, %v316_v60  ;;  %v365_v61 = vmul.f32 %v2255_v25, %v316_v60  ;;  %1752 = vset.pattern.permute.xlu1 %v3184_v5  ;;  %v1149_v2 = vadd.f32 %v3181_v27, %v1104_v55  ;;  %v1152_v52 = vadd.f32 %v2386_v32, %v1107_v28 }
 0x150   :  { %1336 = vmatprep.mubr.f32.mxu0 %v1164_v4  ;;  %711 = vperm.xlu1 %1752, %v2586_v19   ;;  %v1166_v46 = vmax.f32 %v1134_v11, 0.0  ;;  %v1150_v14 = vadd.f32 %v2386_v32, %v1105_v49  ;;  %v1091_v40 = vadd.f32 %v1059_v41, %v3185_v20  ;;  %v1090_v59 = vadd.f32 %v1058_v37, %v3186_v6  ;;  %v3190_v11 = vld [vmem:[#allocation16_spill] sm:$0xff] }
 0x151   :  { %v948_v58 = vadd.f32 %v3187_v18, %v364_v42  ;;  %v949_v63 = vadd.f32 %v3188_v35, %v365_v61  ;;  %1337 = vmatmul.mubr.f32.vlgmr.msra.gmra.mrb[0].mxu0 %v1163_v43  ;;  %v1181_v45 = vmax.f32 %v1149_v2, 0.0  ;;  %v1165_v23 = vmax.f32 %v1133_v57, 0.0 }
 0x152   :  { %1342 = vmatprep.mubr.f32.mxu0 %v1166_v46  ;;  %v1182_v51 = vmax.f32 %v1150_v14, 0.0  ;;  %v1136_v29 = vadd.f32 %v2386_v32, %v1091_v40  ;;  %v1135_v8 = vadd.f32 %v3181_v27, %v1090_v59  ;;  %v1151_v15 = vadd.f32 %v3181_v27, %v1106_v39  ;;  %v596_v39 = vpop.permute.xlu0 %595  ;;  %v3193_v40 = vld [vmem:[#allocation35_spill] sm:$0xff] }
 0x153   :  { %v2664_v54 = vadd.f32 %v948_v58, %v3189_v22  ;;  %v2667_v34 = vadd.f32 %v949_v63, %v3190_v11  ;;  %v388_v62 = vpop.permute.xlu1 %387  ;;  %v3191_v21 = vmov 7   ;;  %v1184_v28 = vmax.f32 %v1152_v52, 0.0 }
 0x154   :  { %1390 = vmatprep.mubr.f32.mxu1 %v1182_v51  ;;  %1754 = vset.pattern.permute.xlu1 %v3191_v21  ;;  %v1168_v30 = vmax.f32 %v1136_v29, 0.0  ;;  %v1167_v9 = vmax.f32 %v1135_v8, 0.0  ;;  %v1183_v48 = vmax.f32 %v1151_v15, 0.0  ;;  %v452_v55 = vmul.f32 %v2258_v47, %v388_v62  ;;  %v3195_v29 = vld [vmem:[#allocation8_spill] sm:$0xff] }
 0x155   :  { %1343 = vmatmul.mubr.f32.gmra.mrb[2].mxu0 %v1165_v23  ;;  %1391 = vmatmul.mubr.f32.gmra.mrb[2].mxu1 %v1181_v45  ;;  %v660_v49 = vmul.f32 %v3174_v17, %v596_v39  ;;  %v661_v42 = vmul.f32 %v3175_v26, %v596_v39  ;;  %v780_v6 = vmul.f32 %v3161_v7, %v3193_v40  ;;  %v3196_v39 = vld [vmem:[#allocation42_spill] sm:$0xff] }
 0x156   :  { %815 = vperm.xlu1 %1754, %v2586_v19   ;;  %1396 = vmatprep.mubr.f32.mxu1 %v1184_v28  ;;  %v2681_v19 = vld [vmem:[%s3046_s0 + $0x78] sm:$0xff]  ;;  %v781_v59 = vmul.f32 %v3162_v53, %v3193_v40 }
 0x157   :  { %1348 = vmatprep.mubr.f32.mxu0 %v1168_v30 }
 0x158   :  { %v492_v38 = vpop.permute.xlu1 %491 }
 0x159   :  { %1349 = vmatmul.mubr.f32.gmra.mrb[4].mxu0 %v1167_v9  ;;  %1397 = vmatmul.mubr.f32.gmra.mrb[4].mxu1 %v1183_v48  ;;  %v556_v60 = vmul.f32 %v2344_v16, %v492_v38  ;;  %v557_v4 = vmul.f32 %v2362_v24, %v492_v38 }
 0x15a   :  { %847 = vperm.xlu1 %1754, %v2555_v56   ;;  %v453_v56 = vmul.f32 %v2261_v3, %v388_v62 }
 0x15b   :  { %v996_v35 = vadd.f32 %v660_v49, %v556_v60  ;;  %v997_v63 = vadd.f32 %v661_v42, %v557_v4 }
 0x15c   :  { %v524_v13 = vpop.permute.xlu1 %523 }
 0x15d   :  { %v572_v11 = vmul.f32 %v2344_v16, %v524_v13  ;;  %v573_v62 = vmul.f32 %v2362_v24, %v524_v13  ;;  %v351_v13 = vmul.f32 %v2255_v25, %v3196_v39 }
 0x15e   :  { %1756 = vset.pattern.permute.xlu1 %v3177_v44  ;;  %v3192_v44 = vld [vmem:[#allocation25_spill] sm:$0xff] }
 0x15f   :  { %403 = vperm.xlu1 %1756, %v1767_v0   ;;  %v348_v37 = vmul.f32 %v2252_v12, %v3192_v44  ;;  %v349_v41 = vmul.f32 %v2255_v25, %v3192_v44  ;;  %v350_v44 = vmul.f32 %v2252_v12, %v3196_v39 }
 0x161   :  { %v628_v43 = vpop.permute.xlu1 %627  ;;  %v932_v61 = vadd.f32 %v452_v55, %v348_v37  ;;  %v933_v2 = vadd.f32 %v453_v56, %v349_v41 }
 0x162   :  { %v676_v18 = vmul.f32 %v3174_v17, %v628_v43  ;;  %v677_v58 = vmul.f32 %v3175_v26, %v628_v43 }
 0x163   :  { %435 = vperm.xlu1 %1756, %v2681_v19   ;;  %v965_v22 = vadd.f32 %v933_v2, %v3195_v29 }
 0x164   :  { %v1012_v48 = vadd.f32 %v676_v18, %v572_v11  ;;  %v1013_v38 = vadd.f32 %v677_v58, %v573_v62  ;;  %v3198_v58 = vld [vmem:[#allocation9_spill] sm:$0xff]  ;;  %v3201_v62 = vld [vmem:[#allocation18_spill] sm:$0xff] }
 0x166   :  { %v700_v57 = vpop.permute.xlu1 %699 }
 0x167   :  { %1758 = vset.pattern.permute.xlu1 %v3133_v36  ;;  %v764_v36 = vmul.f32 %v3161_v7, %v700_v57  ;;  %v765_v46 = vmul.f32 %v3162_v53, %v700_v57 }
 0x168   :  { %539 = vperm.xlu1 %1758, %v2681_v19  }
 0x16b   :  { %v804_v52 = vpop.permute.xlu1 %803 }
 0x16c   :  { %1759 = vset.pattern.permute.xlu1 %v3179_v10  ;;  %v868_v14 = vmul.f32 %v2318_v31, %v804_v52  ;;  %v869_v20 = vmul.f32 %v2327_v1, %v804_v52  ;;  %v3194_v10 = vld [vmem:[#allocation7_spill] sm:$0xff] }
 0x16d   :  { %611 = vperm.xlu1 %1759, %v1767_v0   ;;  %v964_v23 = vadd.f32 %v932_v61, %v3194_v10 }
 0x16e   :  { %v1028_v45 = vadd.f32 %v868_v14, %v764_v36  ;;  %v1029_v51 = vadd.f32 %v869_v20, %v765_v46  ;;  %v3197_v36 = vld [vmem:[#allocation51_spill] sm:$0xff] }
 0x16f   :  { %v836_v8 = vpop.permute.xlu1 %835  ;;  %v366_v46 = vmul.f32 %v2252_v12, %v3197_v36  ;;  %v367_v14 = vmul.f32 %v2255_v25, %v3197_v36 }
 0x170   :  { %v1060_v15 = vadd.f32 %v1028_v45, %v996_v35  ;;  %v1061_v28 = vadd.f32 %v1029_v51, %v997_v63  ;;  %v884_v30 = vmul.f32 %v2318_v31, %v836_v8  ;;  %v885_v9 = vmul.f32 %v2327_v1, %v836_v8  ;;  %v3199_v63 = vld [vmem:[#allocation10_spill] sm:$0xff] }
 0x171   :  { %1760 = vset.pattern.permute.xlu1 %v3184_v5 }
 0x172   :  { %v1044_v43 = vadd.f32 %v884_v30, %v780_v6  ;;  %v1045_v57 = vadd.f32 %v885_v9, %v781_v59  ;;  %715 = vperm.xlu1 %1760, %v1767_v0   ;;  %v1093_v55 = vadd.f32 %v1061_v28, %v965_v22  ;;  %v1092_v56 = vadd.f32 %v1060_v15, %v964_v23  ;;  %v3200_v22 = vld [vmem:[#allocation17_spill] sm:$0xff]  ;;  %v3202_v30 = vld [vmem:[#allocation32_spill] sm:$0xff] }
 0x173   :  { %v558_v9 = vmul.f32 %v2344_v16, %v3202_v30 }
 0x174   :  { %v1076_v37 = vadd.f32 %v1044_v43, %v1012_v48  ;;  %v1077_v41 = vadd.f32 %v1045_v57, %v1013_v38  ;;  %v392_v60 = vpop.permute.xlu1 %391  ;;  %v1138_v4 = vadd.f32 %v2386_v32, %v1093_v55  ;;  %v1137_v49 = vadd.f32 %v3181_v27, %v1092_v56 }
 0x175   :  { %v454_v5 = vmul.f32 %v2258_v47, %v392_v60  ;;  %v455_v42 = vmul.f32 %v2261_v3, %v392_v60 }
 0x176   :  { %747 = vperm.xlu1 %1760, %v2681_v19   ;;  %v1170_v0 = vmax.f32 %v1138_v4, 0.0  ;;  %v1169_v61 = vmax.f32 %v1137_v49, 0.0  ;;  %v1109_v2 = vadd.f32 %v1077_v41, %v2667_v34  ;;  %v1108_v52 = vadd.f32 %v1076_v37, %v2664_v54  ;;  %v632_v4 = vpop.permute.xlu0 %631 }
 0x177   :  { %v934_v20 = vadd.f32 %v454_v5, %v350_v44  ;;  %v935_v40 = vadd.f32 %v455_v42, %v351_v13  ;;  %v679_v36 = vmul.f32 %v3175_v26, %v632_v4 }
 0x178   :  { %v424_v6 = vpop.permute.xlu1 %423  ;;  %1354 = vmatprep.mubr.f32.mxu0 %v1170_v0  ;;  %v1154_v59 = vadd.f32 %v2386_v32, %v1109_v2  ;;  %v1153_v18 = vadd.f32 %v3181_v27, %v1108_v52  ;;  %v678_v52 = vmul.f32 %v3174_v17, %v632_v4 }
 0x179   :  { %v966_v35 = vadd.f32 %v934_v20, %v3198_v58  ;;  %v967_v34 = vadd.f32 %v935_v40, %v3199_v63  ;;  %v470_v54 = vmul.f32 %v2258_v47, %v424_v6  ;;  %v471_v45 = vmul.f32 %v2261_v3, %v424_v6  ;;  %1355 = vmatmul.mubr.f32.gmra.mrb[6].mxu0 %v1169_v61 }
 0x17a   :  { %1762 = vset.pattern.permute.xlu1 %v3191_v21  ;;  %v1186_v51 = vmax.f32 %v1154_v59, 0.0  ;;  %v1185_v10 = vmax.f32 %v1153_v18, 0.0  ;;  %v559_v21 = vmul.f32 %v2362_v24, %v3202_v30 }
 0x17b   :  { %v950_v23 = vadd.f32 %v470_v54, %v366_v46  ;;  %v951_v29 = vadd.f32 %v471_v45, %v367_v14  ;;  %851 = vperm.xlu1 %1762, %v2681_v19   ;;  %v3203_v19 = vld [vmem:[#allocation26_spill] sm:$0xff] }
 0x17c   :  { %1402 = vmatprep.mubr.f32.mxu1 %v1186_v51  ;;  %v870_v57 = vmul.f32 %v2318_v31, %v3203_v19  ;;  %v871_v55 = vmul.f32 %v2327_v1, %v3203_v19 }
 0x17d   :  { %v982_v11 = vadd.f32 %v950_v23, %v3200_v22  ;;  %v983_v8 = vadd.f32 %v951_v29, %v3201_v62  ;;  %v528_v15 = vpop.permute.xlu1 %527  ;;  %1403 = vmatmul.mubr.f32.gmra.mrb[6].mxu1 %v1185_v10 }
 0x17e   :  { %v574_v61 = vmul.f32 %v2344_v16, %v528_v15  ;;  %v575_v2 = vmul.f32 %v2362_v24, %v528_v15 }
 0x180   :  { %v1014_v63 = vadd.f32 %v678_v52, %v574_v61 }
 0x182   :  { %v600_v28 = vpop.permute.xlu1 %599 }
 0x183   :  { %v662_v48 = vmul.f32 %v3174_v17, %v600_v28  ;;  %v663_v38 = vmul.f32 %v3175_v26, %v600_v28 }
 0x185   :  { %v998_v44 = vadd.f32 %v662_v48, %v558_v9  ;;  %v999_v13 = vadd.f32 %v663_v38, %v559_v21 }
 0x187   :  { %v704_v43 = vpop.permute.xlu1 %703 }
 0x188   :  { %v766_v56 = vmul.f32 %v3161_v7, %v704_v43  ;;  %v767_v39 = vmul.f32 %v3162_v53, %v704_v43 }
 0x18a   :  { %v1030_v37 = vadd.f32 %v870_v57, %v766_v56  ;;  %v1031_v41 = vadd.f32 %v871_v55, %v767_v39 }
 0x18b   :  { %v736_v60 = vpop.permute.xlu1 %735 }
 0x18c   :  { %v1062_v49 = vadd.f32 %v1030_v37, %v998_v44  ;;  %v1063_v5 = vadd.f32 %v1031_v41, %v999_v13  ;;  %v782_v40 = vmul.f32 %v3161_v7, %v736_v60  ;;  %v783_v6 = vmul.f32 %v3162_v53, %v736_v60  ;;  %v3204_v44 = vld [vmem:[#allocation27_spill] sm:$0xff] }
 0x18d   :  { %v888_v13 = vmul.f32 %v2318_v31, %v3204_v44  ;;  %v889_v37 = vmul.f32 %v2327_v1, %v3204_v44 }
 0x18e   :  { %v1095_v42 = vadd.f32 %v1063_v5, %v967_v34  ;;  %v1094_v0 = vadd.f32 %v1062_v49, %v966_v35  ;;  %v1015_v34 = vadd.f32 %v679_v36, %v575_v2  ;;  %v3205_v2 = vld [vmem:[#allocation36_spill] sm:$0xff] }
 0x18f   :  { %v768_v52 = vmul.f32 %v3161_v7, %v3205_v2  ;;  %v769_v36 = vmul.f32 %v3162_v53, %v3205_v2 }
 0x190   :  { %v840_v46 = vpop.permute.xlu1 %839  ;;  %v1140_v14 = vadd.f32 %v2386_v32, %v1095_v42  ;;  %v1139_v20 = vadd.f32 %v3181_v27, %v1094_v0 }
 0x191   :  { %v886_v59 = vmul.f32 %v2318_v31, %v840_v46  ;;  %v887_v18 = vmul.f32 %v2327_v1, %v840_v46 }
 0x192   :  { %v1172_v58 = vmax.f32 %v1140_v14, 0.0  ;;  %v1171_v35 = vmax.f32 %v1139_v20, 0.0  ;;  %v3206_v20 = vld [vmem:[#allocation19_spill] sm:$0xff] }
 0x193   :  { %v1046_v54 = vadd.f32 %v886_v59, %v782_v40  ;;  %v1047_v45 = vadd.f32 %v887_v18, %v783_v6  ;;  %v3207_v6 = vld [vmem:[#allocation20_spill] sm:$0xff] }
 0x194   :  { %1360 = vmatprep.mubr.f32.mxu0 %v1172_v58 }
 0x195   :  { %v1078_v51 = vadd.f32 %v1046_v54, %v1014_v63  ;;  %v1079_v10 = vadd.f32 %v1047_v45, %v1015_v34  ;;  %v324_v23 = vpop.permute.xlu1 %323  ;;  %1361 = vmatmul.mubr.f32.gmra.mrb[8].mxu0 %v1171_v35 }
 0x196   :  { %v368_v57 = vmul.f32 %v2252_v12, %v324_v23  ;;  %v369_v55 = vmul.f32 %v2255_v25, %v324_v23 }
 0x197   :  { %v1111_v29 = vadd.f32 %v1079_v10, %v983_v8  ;;  %v1110_v22 = vadd.f32 %v1078_v51, %v982_v11  ;;  %v576_v8 = vmul.f32 %v2344_v16, %v2566_v33  ;;  %v577_v11 = vmul.f32 %v2362_v24, %v2566_v33 }
 0x199   :  { %v1156_v62 = vadd.f32 %v2386_v32, %v1111_v29  ;;  %v1155_v15 = vadd.f32 %v3181_v27, %v1110_v22 }
 0x19a   :  { %v428_v28 = vpop.permute.xlu1 %427 }
 0x19b   :  { %v1188_v30 = vmax.f32 %v1156_v62, 0.0  ;;  %v1187_v9 = vmax.f32 %v1155_v15, 0.0  ;;  %v472_v43 = vmul.f32 %v2258_v47, %v428_v28  ;;  %v473_v19 = vmul.f32 %v2261_v3, %v428_v28 }
 0x19d   :  { %1408 = vmatprep.mubr.f32.mxu1 %v1188_v30  ;;  %v952_v60 = vadd.f32 %v472_v43, %v368_v57  ;;  %v953_v4 = vadd.f32 %v473_v19, %v369_v55  ;;  %v3208_v30 = vld [vmem:[#allocation29_spill] sm:$0xff]  ;;  %v3209_v55 = vld [vmem:[#allocation31_spill] sm:$0xff] }
 0x19e   :  { %1409 = vmatmul.mubr.f32.gmra.mrb[8].mxu1 %v1187_v9  ;;  %v474_v9 = vmul.f32 %v2258_v47, %v3208_v30 }
 0x19f   :  { %v500_v21 = vpop.permute.xlu1 %499  ;;  %v984_v40 = vadd.f32 %v952_v60, %v3206_v20  ;;  %v985_v59 = vadd.f32 %v953_v4, %v3207_v6  ;;  %v3211_v4 = vld [vmem:[#allocation47_spill] sm:$0xff] }
 0x1a0   :  { %v560_v63 = vmul.f32 %v2344_v16, %v500_v21  ;;  %v561_v34 = vmul.f32 %v2362_v24, %v500_v21  ;;  %v475_v21 = vmul.f32 %v2261_v3, %v3208_v30  ;;  %v3214_v6 = vld [vmem:[#allocation11_spill] sm:$0xff] }
 0x1a4   :  { %v604_v48 = vpop.permute.xlu1 %603 }
 0x1a5   :  { %v664_v46 = vmul.f32 %v3174_v17, %v604_v48  ;;  %v665_v14 = vmul.f32 %v3175_v26, %v604_v48 }
 0x1a7   :  { %v1000_v23 = vadd.f32 %v664_v46, %v560_v63  ;;  %v1001_v29 = vadd.f32 %v665_v14, %v561_v34 }
 0x1a8   :  { %v636_v38 = vpop.permute.xlu1 %635 }
 0x1a9   :  { %v680_v56 = vmul.f32 %v3174_v17, %v636_v38  ;;  %v681_v39 = vmul.f32 %v3175_v26, %v636_v38 }
 0x1ab   :  { %v1016_v5 = vadd.f32 %v680_v56, %v576_v8  ;;  %v1017_v42 = vadd.f32 %v681_v39, %v577_v11  ;;  %v3210_v39 = vld [vmem:[#allocation30_spill] sm:$0xff] }
 0x1ad   :  { %v740_v41 = vpop.permute.xlu1 %739 }
 0x1ae   :  { %v784_v49 = vmul.f32 %v3161_v7, %v740_v41  ;;  %v785_v33 = vmul.f32 %v3162_v53, %v740_v41 }
 0x1b0   :  { %v1048_v0 = vadd.f32 %v888_v13, %v784_v49  ;;  %v1049_v61 = vadd.f32 %v889_v37, %v785_v33  ;;  %v354_v49 = vmul.f32 %v2252_v12, %v3211_v4  ;;  %v355_v33 = vmul.f32 %v2255_v25, %v3211_v4 }
 0x1b2   :  { %v1080_v18 = vadd.f32 %v1048_v0, %v1016_v5  ;;  %v1081_v58 = vadd.f32 %v1049_v61, %v1017_v42  ;;  %v812_v35 = vpop.permute.xlu1 %811  ;;  %v3212_v5 = vld [vmem:[#allocation21_spill] sm:$0xff]  ;;  %v3213_v0 = vld [vmem:[#allocation22_spill] sm:$0xff] }
 0x1b3   :  { %v872_v54 = vmul.f32 %v2318_v31, %v812_v35  ;;  %v873_v45 = vmul.f32 %v2327_v1, %v812_v35 }
 0x1b4   :  { %v1113_v51 = vadd.f32 %v1081_v58, %v985_v59  ;;  %v1112_v10 = vadd.f32 %v1080_v18, %v984_v40  ;;  %v3215_v18 = vld [vmem:[#allocation12_spill] sm:$0xff] }
 0x1b5   :  { %v1032_v22 = vadd.f32 %v872_v54, %v768_v52  ;;  %v1033_v62 = vadd.f32 %v873_v45, %v769_v36  ;;  %v608_v45 = vpop.permute.xlu0 %607 }
 0x1b6   :  { %v1158_v15 = vadd.f32 %v2386_v32, %v1113_v51  ;;  %v1157_v28 = vadd.f32 %v3181_v27, %v1112_v10 }
 0x1b7   :  { %v1064_v48 = vadd.f32 %v1032_v22, %v1000_v23  ;;  %v1065_v38 = vadd.f32 %v1033_v62, %v1001_v29  ;;  %v328_v43 = vpop.permute.xlu1 %327  ;;  %v666_v23 = vmul.f32 %v3174_v17, %v608_v45  ;;  %v667_v29 = vmul.f32 %v3175_v26, %v608_v45 }
 0x1b8   :  { %v370_v19 = vmul.f32 %v2252_v12, %v328_v43  ;;  %v371_v8 = vmul.f32 %v2255_v25, %v328_v43  ;;  %v1190_v11 = vmax.f32 %v1158_v15, 0.0  ;;  %v1189_v57 = vmax.f32 %v1157_v28, 0.0 }
 0x1b9   :  { %v1097_v56 = vadd.f32 %v1065_v38, %v3209_v55  ;;  %v1096_v44 = vadd.f32 %v1064_v48, %v3210_v39 }
 0x1ba   :  { %v954_v13 = vadd.f32 %v474_v9, %v370_v19  ;;  %v955_v37 = vadd.f32 %v475_v21, %v371_v8  ;;  %1414 = vmatprep.mubr.f32.mxu1 %v1190_v11  ;;  %v3216_v8 = vld [vmem:[#allocation38_spill] sm:$0xff] }
 0x1bb   :  { %1415 = vmatmul.mubr.f32.gmra.mrb[10].mxu1 %v1189_v57  ;;  %v1142_v41 = vadd.f32 %v2386_v32, %v1097_v56  ;;  %v1141_v60 = vadd.f32 %v3181_v27, %v1096_v44  ;;  %v786_v11 = vmul.f32 %v3161_v7, %v3216_v8  ;;  %v787_v57 = vmul.f32 %v3162_v53, %v3216_v8 }
 0x1bc   :  { %v986_v42 = vadd.f32 %v954_v13, %v3212_v5  ;;  %v987_v61 = vadd.f32 %v955_v37, %v3213_v0  ;;  %v400_v2 = vpop.permute.xlu1 %399 }
 0x1bd   :  { %v458_v52 = vmul.f32 %v2258_v47, %v400_v2  ;;  %v459_v36 = vmul.f32 %v2261_v3, %v400_v2  ;;  %v1174_v46 = vmax.f32 %v1142_v41, 0.0  ;;  %v1173_v14 = vmax.f32 %v1141_v60, 0.0 }
 0x1bf   :  { %v938_v20 = vadd.f32 %v458_v52, %v354_v49  ;;  %v939_v40 = vadd.f32 %v459_v36, %v355_v33  ;;  %1366 = vmatprep.mubr.f32.mxu0 %v1174_v46 }
 0x1c0   :  { %1367 = vmatmul.mubr.f32.gmra.mrb[10].mxu0 %v1173_v14 }
 0x1c1   :  { %v970_v59 = vadd.f32 %v938_v20, %v3214_v6  ;;  %v971_v58 = vadd.f32 %v939_v40, %v3215_v18  ;;  %v504_v35 = vpop.permute.xlu1 %503 }
 0x1c2   :  { %v562_v51 = vmul.f32 %v2344_v16, %v504_v35  ;;  %v563_v10 = vmul.f32 %v2362_v24, %v504_v35 }
 0x1c4   :  { %v1002_v48 = vadd.f32 %v666_v23, %v562_v51  ;;  %v1003_v38 = vadd.f32 %v667_v29, %v563_v10  ;;  %v3218_v29 = vld [vmem:[#allocation23_spill] sm:$0xff] }
 0x1c5   :  { %v536_v63 = vpop.permute.xlu1 %535 }
 0x1c6   :  { %v578_v55 = vmul.f32 %v2344_v16, %v536_v63  ;;  %v579_v56 = vmul.f32 %v2362_v24, %v536_v63 }
 0x1ca   :  { %v640_v34 = vpop.permute.xlu1 %639 }
 0x1cb   :  { %v682_v9 = vmul.f32 %v3174_v17, %v640_v34  ;;  %v683_v21 = vmul.f32 %v3175_v26, %v640_v34 }
 0x1cd   :  { %v1018_v60 = vadd.f32 %v682_v9, %v578_v55  ;;  %v1019_v4 = vadd.f32 %v683_v21, %v579_v56 }
 0x1cf   :  { %v712_v54 = vpop.permute.xlu1 %711 }
 0x1d0   :  { %v770_v62 = vmul.f32 %v3161_v7, %v712_v54  ;;  %v771_v15 = vmul.f32 %v3162_v53, %v712_v54  ;;  %v3217_v54 = vld [vmem:[#allocation52_spill] sm:$0xff] }
 0x1d5   :  { %v816_v22 = vpop.permute.xlu1 %815 }
 0x1d6   :  { %v874_v28 = vmul.f32 %v2318_v31, %v816_v22  ;;  %v875_v30 = vmul.f32 %v2327_v1, %v816_v22 }
 0x1d8   :  { %v1034_v43 = vadd.f32 %v874_v28, %v770_v62  ;;  %v1035_v19 = vadd.f32 %v875_v30, %v771_v15  ;;  %v3219_v62 = vld [vmem:[#allocation24_spill] sm:$0xff]  ;;  %v644_v30 = vpop.permute.xlu0 %643 }
 0x1d9   :  { %v848_v39 = vpop.permute.xlu1 %847 }
 0x1da   :  { %v1066_v44 = vadd.f32 %v1034_v43, %v1002_v48  ;;  %v1067_v13 = vadd.f32 %v1035_v19, %v1003_v38  ;;  %v890_v37 = vmul.f32 %v2318_v31, %v848_v39  ;;  %v891_v41 = vmul.f32 %v2327_v1, %v848_v39  ;;  %v3220_v43 = vld [vmem:[#allocation28_spill] sm:$0xff] }
 0x1db   :  { %v356_v19 = vmul.f32 %v2252_v12, %v3220_v43  ;;  %v357_v8 = vmul.f32 %v2255_v25, %v3220_v43  ;;  %v564_v39 = vmul.f32 %v2344_v16, %v2589_v50 }
 0x1dc   :  { %v1050_v49 = vadd.f32 %v890_v37, %v786_v11  ;;  %v1051_v33 = vadd.f32 %v891_v41, %v787_v57  ;;  %v1099_v5 = vadd.f32 %v1067_v13, %v971_v58  ;;  %v1098_v0 = vadd.f32 %v1066_v44, %v970_v59  ;;  %v820_v21 = vpop.permute.xlu0 %819 }
 0x1dd   :  { %v372_v59 = vmul.f32 %v2252_v12, %v3217_v54  ;;  %v373_v58 = vmul.f32 %v2255_v25, %v3217_v54  ;;  %v876_v55 = vmul.f32 %v2318_v31, %v820_v21  ;;  %v877_v56 = vmul.f32 %v2327_v1, %v820_v21 }
 0x1de   :  { %v1082_v2 = vadd.f32 %v1050_v49, %v1018_v60  ;;  %v1083_v52 = vadd.f32 %v1051_v33, %v1019_v4  ;;  %v404_v36 = vpop.permute.xlu1 %403  ;;  %v1144_v46 = vadd.f32 %v2386_v32, %v1099_v5  ;;  %v1143_v14 = vadd.f32 %v3181_v27, %v1098_v0  ;;  %v3221_v33 = vld [vmem:[#allocation13_spill] sm:$0xff]  ;;  %v3222_v0 = vld [vmem:[#allocation14_spill] sm:$0xff] }
 0x1df   :  { %v460_v48 = vmul.f32 %v2258_v47, %v404_v36  ;;  %v461_v38 = vmul.f32 %v2261_v3, %v404_v36 }
 0x1e0   :  { %v1176_v20 = vmax.f32 %v1144_v46, 0.0  ;;  %v1175_v40 = vmax.f32 %v1143_v14, 0.0  ;;  %v1115_v6 = vadd.f32 %v1083_v52, %v987_v61  ;;  %v1114_v18 = vadd.f32 %v1082_v2, %v986_v42 }
 0x1e1   :  { %v940_v44 = vadd.f32 %v460_v48, %v356_v19  ;;  %v941_v12 = vadd.f32 %v461_v38, %v357_v8 }
 0x1e2   :  { %v436_v35 = vpop.permute.xlu1 %435  ;;  %1372 = vmatprep.mubr.f32.mxu0 %v1176_v20  ;;  %v1160_v63 = vadd.f32 %v2386_v32, %v1115_v6  ;;  %v1159_v34 = vadd.f32 %v3181_v27, %v1114_v18  ;;  %v684_v20 = vmul.f32 %v3174_v17, %v644_v30  ;;  %v685_v18 = vmul.f32 %v3175_v26, %v644_v30 }
 0x1e3   :  { %v476_v45 = vmul.f32 %v2258_v47, %v436_v35  ;;  %v477_v51 = vmul.f32 %v2261_v3, %v436_v35  ;;  %1373 = vmatmul.mubr.f32.gmra.mrb[12].mxu0 %v1175_v40  ;;  %v565_v47 = vmul.f32 %v2362_v24, %v2589_v50  ;;  %v972_v5 = vadd.f32 %v940_v44, %v3221_v33  ;;  %v1598_v50 = vld [vmem:[%s3048_s2 + $0x11] ss:$8 sm:$0x3] }
 0x1e4   :  { %v1192_v10 = vmax.f32 %v1160_v63, 0.0  ;;  %v1191_v61 = vmax.f32 %v1159_v34, 0.0  ;;  %v973_v2 = vadd.f32 %v941_v12, %v3222_v0  ;;  %v3223_v34 = vld [vmem:[#allocation5_spill] sm:$0xff] }
 0x1e5   :  { %v956_v42 = vadd.f32 %v476_v45, %v372_v59  ;;  %v957_v23 = vadd.f32 %v477_v51, %v373_v58  ;;  %v2874_v54 = vrot.slane %v1598_v50, %v3223_v34 }
 0x1e6   :  { %1420 = vmatprep.mubr.f32.mxu1 %v1192_v10  ;;  %v3224_v10 = vld [vmem:[#allocation6_spill] sm:$0xff] }
 0x1e7   :  { %v2842_v22 = vadd.f32 %v956_v42, %v3218_v29  ;;  %v2845_v15 = vadd.f32 %v957_v23, %v3219_v62  ;;  %v540_v28 = vpop.permute.xlu1 %539  ;;  %1421 = vmatmul.mubr.f32.gmra.mrb[12].mxu1 %v1191_v61  ;;  %v2885_v61 = vrot.slane %v1598_v50, %v3224_v10 }
 0x1e8   :  { %v580_v40 = vmul.f32 %v2344_v16, %v540_v28  ;;  %v581_v6 = vmul.f32 %v2362_v24, %v540_v28  ;;  %v1599_v24 = vld [vmem:[%s3048_s2 + $0x12] ss:$8 sm:$0x3] }
 0x1e9   :  { %v2893_v21 = vrot.slane %v1599_v24, %v3224_v10 }
 0x1ea   :  { %v1020_v42 = vadd.f32 %v684_v20, %v580_v40  ;;  %v1021_v23 = vadd.f32 %v685_v18, %v581_v6 }
 0x1ec   :  { %v612_v9 = vpop.permute.xlu1 %611 }
 0x1ed   :  { %v668_v11 = vmul.f32 %v3174_v17, %v612_v9  ;;  %v669_v57 = vmul.f32 %v3175_v26, %v612_v9 }
 0x1ef   :  { %v1004_v37 = vadd.f32 %v668_v11, %v564_v39  ;;  %v1005_v41 = vadd.f32 %v669_v57, %v565_v47 }
 0x1f1   :  { %v716_v3 = vpop.permute.xlu1 %715 }
 0x1f2   :  { %v772_v13 = vmul.f32 %v3161_v7, %v716_v3  ;;  %v773_v25 = vmul.f32 %v3162_v53, %v716_v3 }
 0x1f4   :  { %v1036_v60 = vadd.f32 %v876_v55, %v772_v13  ;;  %v1037_v4 = vadd.f32 %v877_v56, %v773_v25 }
 0x1f5   :  { %v748_v49 = vpop.permute.xlu1 %747 }
 0x1f6   :  { %v1068_v52 = vadd.f32 %v1036_v60, %v1004_v37  ;;  %v1069_v36 = vadd.f32 %v1037_v4, %v1005_v41  ;;  %v788_v58 = vmul.f32 %v3161_v7, %v748_v49  ;;  %v789_v45 = vmul.f32 %v3162_v53, %v748_v49 }
 0x1f8   :  { %v1101_v46 = vadd.f32 %v1069_v36, %v973_v2  ;;  %v1100_v14 = vadd.f32 %v1068_v52, %v972_v5 }
 0x1fa   :  { %v852_v35 = vpop.permute.xlu1 %851  ;;  %v1146_v63 = vadd.f32 %v2386_v32, %v1101_v46  ;;  %v1145_v59 = vadd.f32 %v3181_v27, %v1100_v14 }
 0x1fb   :  { %v892_v17 = vmul.f32 %v2318_v31, %v852_v35  ;;  %v893_v16 = vmul.f32 %v2327_v1, %v852_v35  ;;  %v2889_v1 = vrot.slane %v1599_v24, %v3223_v34 }
 0x1fc   :  { %v1178_v51 = vmax.f32 %v1146_v63, 0.0  ;;  %v1177_v26 = vmax.f32 %v1145_v59, 0.0 }
 0x1fd   :  { %v1052_v29 = vadd.f32 %v892_v17, %v788_v58  ;;  %v1053_v62 = vadd.f32 %v893_v16, %v789_v45  ;;  %v1386_v7 = vpop.f32.mrb[0].mxu1 }
 0x1fe   :  { %1378 = vmatprep.mubr.f32.mxu0 %v1178_v51  ;;  %v1387_v31 = vadd.f32 %v1386_v7, %v2874_v54  ;;  %v1388_v30 = vpop.f32.mrb[1].mxu1 }
 0x1ff   :  { %v1084_v53 = vadd.f32 %v1052_v29, %v1020_v42  ;;  %v1085_v28 = vadd.f32 %v1053_v62, %v1021_v23  ;;  %1379 = vmatmul.mubr.f32.gmra.mrb[14].mxu0 %v1177_v26  ;;  %v1389_v9 = vadd.f32 %v1388_v30, %v2885_v61 }
 0x200   :  { %v1449_v48 = vmax.f32 %v1387_v31, 0.0 }
 0x201   :  { %v1117_v38 = vadd.f32 %v1085_v28, %v2845_v15  ;;  %v1116_v43 = vadd.f32 %v1084_v53, %v2842_v22  ;;  %v1450_v19 = vmax.f32 %v1389_v9, 0.0 }
 0x202   :  { %v1494_v8 = vmul.f32 %v2889_v1, %v1449_v48 }
 0x203   :  { %v1162_v11 = vadd.f32 %v2386_v32, %v1117_v38  ;;  %v1161_v57 = vadd.f32 %v3181_v27, %v1116_v43  ;;  %v1495_v55 = vmul.f32 %v2893_v21, %v1450_v19 }
 0x205   :  { %v1194_v56 = vmax.f32 %v1162_v11, 0.0  ;;  %v1193_v39 = vmax.f32 %v1161_v57, 0.0  ;;  %v1534_v47 = vadd.f32 %v1495_v55, %v1494_v8 }
 0x207   :  { %1426 = vmatprep.mubr.f32.mxu1 %v1194_v56  ;;  %1535 = vadd.xlane.f32.xlu0 %v1534_v47 }
 0x208   :  { %1427 = vmatmul.mubr.f32.gmra.mrb[14].mxu1 %v1193_v39 }
 0x224   :  { %v1338_v3 = vpop.f32.mrb[0].mxu0 }
 0x225   :  { %v1339_v15 = vadd.f32 %v1338_v3, %v2874_v54  ;;  %v1340_v44 = vpop.f32.mrb[1].mxu0 }
 0x226   :  { %v1341_v22 = vadd.f32 %v1340_v44, %v2885_v61 }
 0x227   :  { %v1433_v12 = vmax.f32 %v1339_v15, 0.0 }
 0x228   :  { %v1434_v13 = vmax.f32 %v1341_v22, 0.0  ;;  %v1344_v25 = vpop.f32.mrb[2].mxu0  ;;  %v1392_v32 = vpop.f32.mrb[2].mxu1 }
 0x229   :  { %v1478_v27 = vmul.f32 %v2889_v1, %v1433_v12  ;;  %v1345_v37 = vadd.f32 %v1344_v25, %v2874_v54  ;;  %v1393_v41 = vadd.f32 %v1392_v32, %v2874_v54  ;;  %v1346_v60 = vpop.f32.mrb[3].mxu0  ;;  %v1394_v4 = vpop.f32.mrb[3].mxu1 }
 0x22a   :  { %v1479_v49 = vmul.f32 %v2893_v21, %v1434_v13  ;;  %v1347_v33 = vadd.f32 %v1346_v60, %v2885_v61  ;;  %v1395_v5 = vadd.f32 %v1394_v4, %v2885_v61 }
 0x22b   :  { %v1435_v0 = vmax.f32 %v1345_v37, 0.0  ;;  %v1451_v2 = vmax.f32 %v1393_v41, 0.0 }
 0x22c   :  { %v1436_v52 = vmax.f32 %v1347_v33, 0.0  ;;  %v1452_v36 = vmax.f32 %v1395_v5, 0.0  ;;  %v1350_v50 = vpop.f32.mrb[4].mxu0  ;;  %v1398_v46 = vpop.f32.mrb[4].mxu1  ;;  %v1510_v14 = vadd.f32 %v1479_v49, %v1478_v27 }
 0x22d   :  { %v1480_v20 = vmul.f32 %v2889_v1, %v1435_v0  ;;  %v1496_v40 = vmul.f32 %v2889_v1, %v1451_v2  ;;  %v1351_v6 = vadd.f32 %v1350_v50, %v2874_v54  ;;  %v1399_v18 = vadd.f32 %v1398_v46, %v2874_v54  ;;  %v1352_v35 = vpop.f32.mrb[5].mxu0  ;;  %v1400_v63 = vpop.f32.mrb[5].mxu1 }
 0x22e   :  { %v1481_v34 = vmul.f32 %v2893_v21, %v1436_v52  ;;  %v1497_v59 = vmul.f32 %v2893_v21, %v1452_v36  ;;  %v1353_v58 = vadd.f32 %v1352_v35, %v2885_v61  ;;  %v1401_v45 = vadd.f32 %v1400_v63, %v2885_v61  ;;  %1511 = vadd.xlane.f32.xlu1 %v1510_v14 }
 0x22f   :  { %v1437_v17 = vmax.f32 %v1351_v6, 0.0  ;;  %v1453_v16 = vmax.f32 %v1399_v18, 0.0 }
 0x230   :  { %v1438_v51 = vmax.f32 %v1353_v58, 0.0  ;;  %v1454_v24 = vmax.f32 %v1401_v45, 0.0  ;;  %v1513_v26 = vadd.f32 %v1481_v34, %v1480_v20  ;;  %v1537_v10 = vadd.f32 %v1497_v59, %v1496_v40  ;;  %v2943_v34 = vld [vmem:[%s3048_s2 + $0x13] ss:$0 sm:$0xff] }
 0x231   :  { %v1482_v42 = vmul.f32 %v2889_v1, %v1437_v17  ;;  %v1498_v23 = vmul.f32 %v2889_v1, %v1453_v16 }
 0x232   :  { %v1483_v29 = vmul.f32 %v2893_v21, %v1438_v51  ;;  %v1499_v62 = vmul.f32 %v2893_v21, %v1454_v24  ;;  %1514 = vadd.xlane.f32.xlu0 %v1513_v26  ;;  %1538 = vadd.xlane.f32.xlu1 %v1537_v10 }
 0x234   :  { %v1516_v7 = vadd.f32 %v1483_v29, %v1482_v42  ;;  %v1540_v53 = vadd.f32 %v1499_v62, %v1498_v23 }
 0x236   :  { %1517 = vadd.xlane.f32.xlu0 %v1516_v7 }
 0x23a   :  { %1541 = vadd.xlane.f32.xlu0 %v1540_v53 }
 0x24c   :  { %v1356_v28 = vpop.f32.mrb[6].mxu0 }
 0x24d   :  { %v1357_v31 = vadd.f32 %v1356_v28, %v2874_v54  ;;  %v1358_v30 = vpop.f32.mrb[7].mxu0 }
 0x24e   :  { %v1359_v9 = vadd.f32 %v1358_v30, %v2885_v61 }
 0x24f   :  { %v1439_v48 = vmax.f32 %v1357_v31, 0.0 }
 0x250   :  { %v1440_v38 = vmax.f32 %v1359_v9, 0.0  ;;  %v1404_v43 = vpop.f32.mrb[6].mxu1 }
 0x251   :  { %v1484_v19 = vmul.f32 %v2889_v1, %v1439_v48  ;;  %v1405_v8 = vadd.f32 %v1404_v43, %v2874_v54  ;;  %v1406_v11 = vpop.f32.mrb[7].mxu1 }
 0x252   :  { %v1485_v57 = vmul.f32 %v2893_v21, %v1440_v38  ;;  %v1407_v55 = vadd.f32 %v1406_v11, %v2885_v61 }
 0x253   :  { %v1455_v56 = vmax.f32 %v1405_v8, 0.0 }
 0x254   :  { %v1456_v39 = vmax.f32 %v1407_v55, 0.0  ;;  %v1519_v47 = vadd.f32 %v1485_v57, %v1484_v19 }
 0x255   :  { %v1500_v3 = vmul.f32 %v2889_v1, %v1455_v56 }
 0x256   :  { %v1501_v15 = vmul.f32 %v2893_v21, %v1456_v39  ;;  %1520 = vadd.xlane.f32.xlu1 %v1519_v47 }
 0x258   :  { %v1543_v44 = vadd.f32 %v1501_v15, %v1500_v3 }
 0x25a   :  { %1544 = vadd.xlane.f32.xlu1 %v1543_v44 }
 0x268   :  { %v1362_v22 = vpop.f32.mrb[8].mxu0 }
 0x269   :  { %v1363_v12 = vadd.f32 %v1362_v22, %v2874_v54  ;;  %v1364_v13 = vpop.f32.mrb[9].mxu0 }
 0x26a   :  { %v1365_v25 = vadd.f32 %v1364_v13, %v2885_v61 }
 0x26b   :  { %v1441_v32 = vmax.f32 %v1363_v12, 0.0 }
 0x26c   :  { %v1442_v27 = vmax.f32 %v1365_v25, 0.0 }
 0x26d   :  { %v1486_v37 = vmul.f32 %v2889_v1, %v1441_v32 }
 0x26e   :  { %v1487_v41 = vmul.f32 %v2893_v21, %v1442_v27 }
 0x270   :  { %v1522_v60 = vadd.f32 %v1487_v41, %v1486_v37 }
 0x271   :  { %v1410_v4 = vpop.f32.mrb[8].mxu1 }
 0x272   :  { %v1411_v49 = vadd.f32 %v1410_v4, %v2874_v54  ;;  %1523 = vadd.xlane.f32.xlu0 %v1522_v60  ;;  %v1412_v33 = vpop.f32.mrb[9].mxu1 }
 0x273   :  { %v1413_v5 = vadd.f32 %v1412_v33, %v2885_v61 }
 0x274   :  { %v1457_v0 = vmax.f32 %v1411_v49, 0.0 }
 0x275   :  { %v1458_v2 = vmax.f32 %v1413_v5, 0.0 }
 0x276   :  { %v1502_v52 = vmul.f32 %v2889_v1, %v1457_v0 }
 0x277   :  { %v1503_v36 = vmul.f32 %v2893_v21, %v1458_v2 }
 0x279   :  { %v1546_v50 = vadd.f32 %v1503_v36, %v1502_v52 }
 0x27b   :  { %1547 = vadd.xlane.f32.xlu0 %v1546_v50 }
 0x28e   :  { %v1416_v46 = vpop.f32.mrb[10].mxu1 }
 0x28f   :  { %v1417_v14 = vadd.f32 %v1416_v46, %v2874_v54  ;;  %v1418_v20 = vpop.f32.mrb[11].mxu1 }
 0x290   :  { %v1419_v40 = vadd.f32 %v1418_v20, %v2885_v61 }
 0x291   :  { %v1459_v6 = vmax.f32 %v1417_v14, 0.0 }
 0x292   :  { %v1460_v18 = vmax.f32 %v1419_v40, 0.0 }
 0x293   :  { %v1504_v35 = vmul.f32 %v2889_v1, %v1459_v6  ;;  %v1368_v63 = vpop.f32.mrb[10].mxu0 }
 0x294   :  { %v1505_v59 = vmul.f32 %v2893_v21, %v1460_v18  ;;  %v1369_v58 = vadd.f32 %v1368_v63, %v2874_v54  ;;  %v1370_v45 = vpop.f32.mrb[11].mxu0  ;;  %v1536_v16 = vpop.xlane.xlu0 %1535 }
 0x295   :  { %v1371_v17 = vadd.f32 %v1370_v45, %v2885_v61  ;;  %v1567_v24 = vadd.f32 %v2943_v34, %v1536_v16 }
 0x296   :  { %v1443_v51 = vmax.f32 %v1369_v58, 0.0  ;;  %v1549_v26 = vadd.f32 %v1505_v59, %v1504_v35 }
 0x297   :  { %v1444_v10 = vmax.f32 %v1371_v17, 0.0  ;;  %1584 = vst.msk [vmem:[%s3049_s3 + $0x40] sm:$0xff] %vm1575_vm0, %v1567_v24 }
 0x298   :  { %v1488_v42 = vmul.f32 %v2889_v1, %v1443_v51 }
 0x299   :  { %v1489_v23 = vmul.f32 %v2893_v21, %v1444_v10 }
 0x29b   :  { %v1525_v29 = vadd.f32 %v1489_v23, %v1488_v42 }
 0x29d   :  { %1526 = vadd.xlane.f32.xlu1 %v1525_v29 }
 0x2a1   :  { %1550 = vadd.xlane.f32.xlu1 %v1549_v26 }
 0x2b6   :  { %v1374_v62 = vpop.f32.mrb[12].mxu0 }
 0x2b7   :  { %v1375_v7 = vadd.f32 %v1374_v62, %v2874_v54  ;;  %v1376_v53 = vpop.f32.mrb[13].mxu0 }
 0x2b8   :  { %v1377_v28 = vadd.f32 %v1376_v53, %v2885_v61 }
 0x2b9   :  { %v1445_v31 = vmax.f32 %v1375_v7, 0.0 }
 0x2ba   :  { %v1446_v30 = vmax.f32 %v1377_v28, 0.0  ;;  %v1422_v9 = vpop.f32.mrb[12].mxu1 }
 0x2bb   :  { %v1490_v48 = vmul.f32 %v2889_v1, %v1445_v31  ;;  %v1423_v38 = vadd.f32 %v1422_v9, %v2874_v54  ;;  %v1512_v43 = vpop.xlane.xlu1 %1511  ;;  %v1424_v19 = vpop.f32.mrb[13].mxu1 }
 0x2bc   :  { %v1491_v8 = vmul.f32 %v2893_v21, %v1446_v30  ;;  %v1559_v11 = vadd.f32 %v2943_v34, %v1512_v43  ;;  %v1425_v57 = vadd.f32 %v1424_v19, %v2885_v61 }
 0x2bd   :  { %v1461_v55 = vmax.f32 %v1423_v38, 0.0 }
 0x2be   :  { %1576 = vst.msk [vmem:[%s3049_s3] sm:$0xff] %vm1575_vm0, %v1559_v11  ;;  %v1462_v56 = vmax.f32 %v1425_v57, 0.0  ;;  %v1528_v39 = vadd.f32 %v1491_v8, %v1490_v48 }
 0x2bf   :  { %v1506_v47 = vmul.f32 %v2889_v1, %v1461_v55  ;;  %v1539_v3 = vpop.xlane.xlu1 %1538  ;;  %v1515_v15 = vpop.xlane.xlu0 %1514 }
 0x2c0   :  { %v1507_v44 = vmul.f32 %v2893_v21, %v1462_v56  ;;  %v1568_v22 = vadd.f32 %v2943_v34, %v1539_v3  ;;  %v1560_v12 = vadd.f32 %v2943_v34, %v1515_v15  ;;  %1529 = vadd.xlane.f32.xlu0 %v1528_v39 }
 0x2c2   :  { %1585 = vst.msk [vmem:[%s3049_s3 + $0x48] sm:$0xff] %vm1575_vm0, %v1568_v22  ;;  %1577 = vst.msk [vmem:[%s3049_s3 + $0x8] sm:$0xff] %vm1575_vm0, %v1560_v12  ;;  %v1552_v13 = vadd.f32 %v1507_v44, %v1506_v47 }
 0x2c3   :  { %v1518_v25 = vpop.xlane.xlu0 %1517 }
 0x2c4   :  { %v1561_v32 = vadd.f32 %v2943_v34, %v1518_v25  ;;  %1553 = vadd.xlane.f32.xlu0 %v1552_v13 }
 0x2c6   :  { %1578 = vst.msk [vmem:[%s3049_s3 + $0x10] sm:$0xff] %vm1575_vm0, %v1561_v32 }
 0x2c7   :  { %v1542_v27 = vpop.xlane.xlu0 %1541 }
 0x2c8   :  { %v1569_v37 = vadd.f32 %v2943_v34, %v1542_v27 }
 0x2ca   :  { %1586 = vst.msk [vmem:[%s3049_s3 + $0x50] sm:$0xff] %vm1575_vm0, %v1569_v37 }
 0x2d2   :  { %v1380_v41 = vpop.f32.mrb[14].mxu0 }
 0x2d3   :  { %v1381_v60 = vadd.f32 %v1380_v41, %v2874_v54  ;;  %v1382_v4 = vpop.f32.mrb[15].mxu0 }
 0x2d4   :  { %v1383_v49 = vadd.f32 %v1382_v4, %v2885_v61 }
 0x2d5   :  { %v1447_v33 = vmax.f32 %v1381_v60, 0.0 }
 0x2d6   :  { %v1448_v5 = vmax.f32 %v1383_v49, 0.0 }
 0x2d7   :  { %v1492_v0 = vmul.f32 %v2889_v1, %v1447_v33 }
 0x2d8   :  { %v1493_v2 = vmul.f32 %v2893_v21, %v1448_v5 }
 0x2da   :  { %v1531_v52 = vadd.f32 %v1493_v2, %v1492_v0 }
 0x2db   :  { %v1428_v36 = vpop.f32.mrb[14].mxu1 }
 0x2dc   :  { %v1429_v50 = vadd.f32 %v1428_v36, %v2874_v54  ;;  %v1430_v46 = vpop.f32.mrb[15].mxu1  ;;  %1532 = vadd.xlane.f32.xlu1 %v1531_v52 }
 0x2dd   :  { %v1431_v14 = vadd.f32 %v1430_v46, %v2885_v61 }
 0x2de   :  { %v1463_v20 = vmax.f32 %v1429_v50, 0.0 }
 0x2df   :  { %v1464_v40 = vmax.f32 %v1431_v14, 0.0 }
 0x2e0   :  { %v1508_v6 = vmul.f32 %v2889_v1, %v1463_v20 }
 0x2e1   :  { %v1509_v18 = vmul.f32 %v2893_v21, %v1464_v40 }
 0x2e3   :  { %v1521_v35 = vpop.xlane.xlu1 %1520  ;;  %v1555_v63 = vadd.f32 %v1509_v18, %v1508_v6 }
 0x2e4   :  { %v1562_v59 = vadd.f32 %v2943_v34, %v1521_v35 }
 0x2e5   :  { %1556 = vadd.xlane.f32.xlu1 %v1555_v63 }
 0x2e6   :  { %1579 = vst.msk [vmem:[%s3049_s3 + $0x18] sm:$0xff] %vm1575_vm0, %v1562_v59 }
 0x2e7   :  { %v1545_v54 = vpop.xlane.xlu1 %1544 }
 0x2e8   :  { %v1570_v58 = vadd.f32 %v2943_v34, %v1545_v54 }
 0x2ea   :  { %1587 = vst.msk [vmem:[%s3049_s3 + $0x58] sm:$0xff] %vm1575_vm0, %v1570_v58 }
 0x2ff   :  { %v1524_v61 = vpop.xlane.xlu0 %1523 }
 0x300   :  { %v1563_v1 = vadd.f32 %v2943_v34, %v1524_v61 }
 0x302   :  { %1580 = vst.msk [vmem:[%s3049_s3 + $0x20] sm:$0xff] %vm1575_vm0, %v1563_v1 }
 0x308   :  { %v1548_v21 = vpop.xlane.xlu0 %1547 }
 0x309   :  { %v1571_v45 = vadd.f32 %v2943_v34, %v1548_v21 }
 0x30b   :  { %1588 = vst.msk [vmem:[%s3049_s3 + $0x60] sm:$0xff] %vm1575_vm0, %v1571_v45 }
 0x32a   :  { %v1527_v17 = vpop.xlane.xlu1 %1526 }
 0x32b   :  { %v1564_v16 = vadd.f32 %v2943_v34, %v1527_v17 }
 0x32d   :  { %1581 = vst.msk [vmem:[%s3049_s3 + $0x28] sm:$0xff] %vm1575_vm0, %v1564_v16 }
 0x32e   :  { %v1551_v51 = vpop.xlane.xlu1 %1550 }
 0x32f   :  { %v1572_v24 = vadd.f32 %v2943_v34, %v1551_v51 }
 0x331   :  { %1589 = vst.msk [vmem:[%s3049_s3 + $0x68] sm:$0xff] %vm1575_vm0, %v1572_v24 }
 0x34d   :  { %v1530_v26 = vpop.xlane.xlu0 %1529 }
 0x34e   :  { %v1565_v10 = vadd.f32 %v2943_v34, %v1530_v26 }
 0x350   :  { %1582 = vst.msk [vmem:[%s3049_s3 + $0x30] sm:$0xff] %vm1575_vm0, %v1565_v10 }
 0x351   :  { %v1554_v42 = vpop.xlane.xlu0 %1553 }
 0x352   :  { %v1573_v23 = vadd.f32 %v2943_v34, %v1554_v42 }
 0x354   :  { %1590 = vst.msk [vmem:[%s3049_s3 + $0x70] sm:$0xff] %vm1575_vm0, %v1573_v23 }
 0x369   :  { %v1533_v29 = vpop.xlane.xlu1 %1532 }
 0x36a   :  { %v1566_v62 = vadd.f32 %v2943_v34, %v1533_v29 }
 0x36c   :  { %1583 = vst.msk [vmem:[%s3049_s3 + $0x38] sm:$0xff] %vm1575_vm0, %v1566_v62 }
 0x372   :  { %v1557_v7 = vpop.xlane.xlu1 %1556 }
 0x373   :  { %v1574_v53 = vadd.f32 %v2943_v34, %v1557_v7 }
 0x375   :  { %1591 = vst.msk [vmem:[%s3049_s3 + $0x78] sm:$0xff] %vm1575_vm0, %v1574_v53 }
 0x376   :  { %1596 = vsyncpa [#allocation3], 1 }

</bundles_post_ra>
